<compile_context>
chip_gen: v6e
topology: v6e:2x2x1
jax: 0.10.0
libtpu: 0.0.40
codegen_flags: <defaults>
</compile_context>

<pallas_src>
import functools
import math

import jax
import jax.numpy as jnp
from jax import lax
from jax.experimental import pallas as pl
from jax.experimental.pallas import tpu as pltpu

LANE = 128            # TPU lane width; conv output channels are padded to this.
_EXACT_GELU = False   # True -> erf GELU (exact PyTorch default), slower VPU path.


def _gelu(x):
    if _EXACT_GELU:
        return 0.5 * x * (1.0 + lax.erf(x * (1.0 / math.sqrt(2.0))))
    c = math.sqrt(2.0 / math.pi)
    return 0.5 * x * (1.0 + jnp.tanh(c * (x + 0.044715 * (x * x * x))))


# ----------------------------------------------------------------------------
# Kernel 1: out = act(x @ w + b)   (conv1 / conv2 im2col GEMMs)
# ----------------------------------------------------------------------------
def _mm_bias_act_kernel(x_ref, w_ref, b_ref, o_ref, *, act):
    acc = jnp.dot(x_ref[...], w_ref[...], preferred_element_type=jnp.float32)
    acc = acc + b_ref[...]                      # (1, N) broadcast over rows
    if act == "gelu":
        acc = _gelu(acc)
    elif act == "relu":
        acc = jnp.maximum(acc, 0.0)
    o_ref[...] = acc.astype(o_ref.dtype)


def matmul_bias_act(x, w, b, act, out_dtype=jnp.bfloat16):
    """x: (M, K) bf16, w: (K, N) bf16, b: (1, N) f32 -> (M, N) out_dtype."""
    M, K = x.shape
    K2, N = w.shape
    assert K == K2 and b.shape == (1, N)
    # Row tiling: shards big batches across v7x's 2 TensorCores and enables
    # DMA/compute pipelining; tiny M (as in the demo) stays one full block.
    TM = M if (M <= 256 or M % 8 != 0) else 256
    return pl.pallas_call(
        functools.partial(_mm_bias_act_kernel, act=act),
        out_shape=jax.ShapeDtypeStruct((M, N), out_dtype),
        grid=(pl.cdiv(M, TM),),
        in_specs=[
            pl.BlockSpec((TM, K), lambda i: (i, 0)),
            pl.BlockSpec((K, N), lambda i: (0, 0)),
            pl.BlockSpec((1, N), lambda i: (0, 0)),
        ],
        out_specs=pl.BlockSpec((TM, N), lambda i: (i, 0)),
        compiler_params=pltpu.CompilerParams(dimension_semantics=("parallel",)),
    )(x, w, b)


# ----------------------------------------------------------------------------
# Kernel 2: fused conv3 (1x1 output spatial) + both MLP heads
# Kernel 3: heads-only fallback (general conv3 spatial size)
# ----------------------------------------------------------------------------
def _fused_conv3_heads_kernel(p3_ref, w3_ref, b3_ref, wh1_ref, bh1_ref,
                              wh2_ref, bh2_ref, o_ref):
    # conv3 as a plain GEMM + GELU; the (B, 64) feature stays in vregs.
    feat = jnp.dot(p3_ref[...], w3_ref[...], preferred_element_type=jnp.float32)
    feat = _gelu(feat + b3_ref[...])
    # fc1 of both heads fused along N (cols 0..511 option head, 512..1023 value).
    h1 = jnp.dot(feat.astype(jnp.bfloat16), wh1_ref[...],
                 preferred_element_type=jnp.float32) + bh1_ref[...]
    h1 = jnp.maximum(h1, 0.0)
    # fc2 of both heads as one 128-lane block matrix.
    out = jnp.dot(h1.astype(jnp.bfloat16), wh2_ref[...],
                  preferred_element_type=jnp.float32) + bh2_ref[...]
    o_ref[...] = out.astype(o_ref.dtype)


def _heads_kernel(feat_ref, wh1_ref, bh1_ref, wh2_ref, bh2_ref, o_ref):
    h1 = jnp.dot(feat_ref[...], wh1_ref[...],
                 preferred_element_type=jnp.float32) + bh1_ref[...]
    h1 = jnp.maximum(h1, 0.0)
    out = jnp.dot(h1.astype(jnp.bfloat16), wh2_ref[...],
                  preferred_element_type=jnp.float32) + bh2_ref[...]
    o_ref[...] = out.astype(o_ref.dtype)


def _full2d(a):
    return pl.BlockSpec(a.shape, lambda: (0, 0))


def fused_conv3_heads(p3, w3, b3, wh1, bh1, wh2, bh2):
    B = p3.shape[0]
    N = wh2.shape[1]
    return pl.pallas_call(
        _fused_conv3_heads_kernel,
        out_shape=jax.ShapeDtypeStruct((B, N), jnp.float32),
        in_specs=[_full2d(p3), _full2d(w3), _full2d(b3), _full2d(wh1),
                  _full2d(bh1), _full2d(wh2), _full2d(bh2)],
        out_specs=pl.BlockSpec((B, N), lambda: (0, 0)),
    )(p3, w3, b3, wh1, bh1, wh2, bh2)


def mlp_heads(feat, wh1, bh1, wh2, bh2):
    B = feat.shape[0]
    N = wh2.shape[1]
    return pl.pallas_call(
        _heads_kernel,
        out_shape=jax.ShapeDtypeStruct((B, N), jnp.float32),
        in_specs=[_full2d(feat), _full2d(wh1), _full2d(bh1),
                  _full2d(wh2), _full2d(bh2)],
        out_specs=pl.BlockSpec((B, N), lambda: (0, 0)),
    )(feat, wh1, bh1, wh2, bh2)


# ----------------------------------------------------------------------------
# Conv2d (NHWC, VALID) via im2col + the Pallas GEMM kernel
# ----------------------------------------------------------------------------
def conv2d_nhwc(x, w_cols, b, *, kh, kw, stride, act="gelu"):
    """x: (B, H, W, Cin) bf16; w_cols: (KH*KW*Cin, OC) bf16 with (kh, kw, c) row
    ordering; b: (1, OC) f32.  Returns (B, OH, OW, OC) bf16."""
    B, H, W, C = x.shape
    OH = (H - kh) // stride + 1
    OW = (W - kw) // stride + 1
    # TODO(synk): move the im2col gather into the Pallas kernel (strided pl.ds
    # loads from a VMEM-resident NHWC block) to avoid this XLA-side patch copy.
    cols = []
    for i in range(kh):
        for j in range(kw):
            cols.append(x[:, i:i + stride * OH:stride, j:j + stride * OW:stride, :])
    p = jnp.stack(cols, axis=3)                       # (B, OH, OW, KH*KW, C)
    p = p.reshape(B * OH * OW, kh * kw * C)
    out = matmul_bias_act(p, w_cols, b, act)          # (B*OH*OW, OC)
    return out.reshape(B, OH, OW, w_cols.shape[1])


# ----------------------------------------------------------------------------
# Parameters (PyTorch layout) + kernel-ready fused/padded parameters
# ----------------------------------------------------------------------------
def init_params(key, c, num_options, conv_out_size):
    ks = jax.random.split(key, 10)
    scale = 0.05

    def w(k, shape):
        return (scale * jax.random.normal(k, shape)).astype(jnp.float32)

    return {
        "conv1_w": w(ks[0], (32, c, 8, 8)), "conv1_b": w(ks[1], (32,)),
        "conv2_w": w(ks[2], (64, 32, 4, 4)), "conv2_b": w(ks[3], (64,)),
        "conv3_w": w(ks[4], (64, 64, 3, 3)), "conv3_b": w(ks[5], (64,)),
        "opt_w1": w(ks[6], (conv_out_size, 512)), "opt_b1": jnp.zeros((512,), jnp.float32),
        "opt_w2": w(ks[7], (512, num_options)), "opt_b2": jnp.zeros((num_options,), jnp.float32),
        "val_w1": w(ks[8], (conv_out_size, 512)), "val_b1": jnp.zeros((512,), jnp.float32),
        "val_w2": w(ks[9], (512, 1)), "val_b2": jnp.zeros((1,), jnp.float32),
    }


def _conv_w_to_cols(w_pt, c_in_pad=None, oc_pad=None):
    """(OC, C, KH, KW) PyTorch conv weight -> (KH*KW*Cpad, OCpad), (kh,kw,c) rows."""
    oc, c, kh, kw = w_pt.shape
    wk = jnp.transpose(w_pt, (2, 3, 1, 0))            # (KH, KW, C, OC)
    if c_in_pad is not None and c_in_pad > c:
        wk = jnp.pad(wk, ((0, 0), (0, 0), (0, c_in_pad - c), (0, 0)))
    if oc_pad is not None and oc_pad > oc:
        wk = jnp.pad(wk, ((0, 0), (0, 0), (0, 0), (0, oc_pad - oc)))
    return wk.reshape(kh * kw * wk.shape[2], wk.shape[3])


def _pad_vec(b, n):
    return jnp.pad(b, (0, n - b.shape[0])) if n > b.shape[0] else b


def prep_params(p, num_options, oh3, ow3):
    bf = jnp.bfloat16
    # conv1: fold /255 into the weights, pad OC 32 -> 128 (lane-dense stores).
    w1 = (_conv_w_to_cols(p["conv1_w"], oc_pad=LANE) * (1.0 / 255.0)).astype(bf)
    b1 = _pad_vec(p["conv1_b"], LANE).reshape(1, LANE)
    # conv2: input channels padded to 128 (matches conv1 output), OC 64 -> 128.
    w2 = _conv_w_to_cols(p["conv2_w"], c_in_pad=LANE, oc_pad=LANE).astype(bf)
    b2 = _pad_vec(p["conv2_b"], LANE).reshape(1, LANE)
    # conv3: input channels padded to 128; OC stays 64 (consumed in-kernel/by fc1).
    w3 = _conv_w_to_cols(p["conv3_w"], c_in_pad=LANE).astype(bf)
    b3 = p["conv3_b"].reshape(1, 64)

    # fc1 of both heads fused along N.  Rows are permuted from PyTorch's (c,h,w)
    # flatten order to our NHWC (h,w,c) feature order (identity when oh3=ow3=1).
    def perm_rows(w):
        return w.reshape(64, oh3, ow3, 512).transpose(1, 2, 0, 3).reshape(64 * oh3 * ow3, 512)

    wh1 = jnp.concatenate([perm_rows(p["opt_w1"]), perm_rows(p["val_w1"])], axis=1).astype(bf)
    bh1 = jnp.concatenate([p["opt_b1"], p["val_b1"]]).reshape(1, 1024)

    # fc2 of both heads as one block matrix, output lanes padded to 128:
    # cols [0, num_options) = option logits, col num_options = value, rest zero.
    wh2 = jnp.zeros((1024, LANE), jnp.float32)
    wh2 = wh2.at[:512, :num_options].set(p["opt_w2"])
    wh2 = wh2.at[512:, num_options].set(p["val_w2"][:, 0])
    bh2 = jnp.zeros((LANE,), jnp.float32)
    bh2 = bh2.at[:num_options].set(p["opt_b2"])
    bh2 = bh2.at[num_options].set(p["val_b2"][0])

    return {
        "w1": w1, "b1": b1, "w2": w2, "b2": b2, "w3": w3, "b3": b3,
        "wh1": wh1, "bh1": bh1, "wh2": wh2.astype(bf), "bh2": bh2.reshape(1, LANE),
    }


# ----------------------------------------------------------------------------
# Forward pass
# ----------------------------------------------------------------------------
def manager_forward(params, x, num_options):
    """x: (B, C, H, W) pixels in [0, 255]. Returns (logits (B, num_options), value (B, 1))."""
    B = x.shape[0]
    # NHWC + bf16; the /255 normalization is folded into the conv1 weights.
    x = jnp.transpose(x, (0, 2, 3, 1)).astype(jnp.bfloat16)
    a1 = conv2d_nhwc(x, params["w1"], params["b1"], kh=8, kw=8, stride=4)
    a2 = conv2d_nhwc(a1, params["w2"], params["b2"], kh=4, kw=4, stride=2)
    H2, W2, C2 = a2.shape[1], a2.shape[2], a2.shape[3]
    if H2 == 3 and W2 == 3:
        # conv3 collapses spatial to 1x1 -> its im2col is a plain reshape; fuse
        # conv3 + flatten + both MLP heads into a single pallas_call.
        p3 = a2.reshape(B, H2 * W2 * C2)
        out = fused_conv3_heads(p3, params["w3"], params["b3"],
                                params["wh1"], params["bh1"],
                                params["wh2"], params["bh2"])
    else:
        # General spatial size: conv3 as its own kernel, then the fused heads.
        a3 = conv2d_nhwc(a2, params["w3"], params["b3"], kh=3, kw=3, stride=1)
        feat = a3.reshape(B, a3.shape[1] * a3.shape[2] * a3.shape[3])
        out = mlp_heads(feat, params["wh1"], params["bh1"],
                        params["wh2"], params["bh2"])
    option_logits = out[:, :num_options]
    value = out[:, num_options:num_options + 1]
    return option_logits, value


# Pure-JAX f32 reference (PyTorch semantics: /255, exact-erf GELU, NCHW flatten).
def reference_forward(p, x, num_options):
    x = x.astype(jnp.float32) / 255.0

    def conv(x, w, b, s):
        y = lax.conv_general_dilated(x, w, (s, s), "VALID",
                                     dimension_numbers=("NCHW", "OIHW", "NCHW"))
        return y + b.reshape(1, -1, 1, 1)

    gelu = lambda v: 0.5 * v * (1.0 + lax.erf(v * (1.0 / math.sqrt(2.0))))
    x = gelu(conv(x, p["conv1_w"], p["conv1_b"], 4))
    x = gelu(conv(x, p["conv2_w"], p["conv2_b"], 2))
    x = gelu(conv(x, p["conv3_w"], p["conv3_b"], 1))
    feat = x.reshape(x.shape[0], -1)
    h_opt = jnp.maximum(feat @ p["opt_w1"] + p["opt_b1"], 0.0)
    logits = h_opt @ p["opt_w2"] + p["opt_b2"]
    h_val = jnp.maximum(feat @ p["val_w1"] + p["val_b1"], 0.0)
    value = h_val @ p["val_w2"] + p["val_b2"]
    return logits, value


if __name__ == "__main__":
    # Small shapes consistent with the conv stack: 36x36 -> 8x8 -> 3x3 -> 1x1.
    B, C, H, W = 2, 4, 36, 36
    NUM_OPTIONS = 8

    def out_dim(s):
        s = (s - 8) // 4 + 1
        s = (s - 4) // 2 + 1
        s = (s - 3) // 1 + 1
        return s

    oh3, ow3 = out_dim(H), out_dim(W)
    conv_out_size = 64 * oh3 * ow3

    key = jax.random.PRNGKey(0)
    kparam, kx = jax.random.split(key)
    pt_params = init_params(kparam, C, NUM_OPTIONS, conv_out_size)
    kparams = prep_params(pt_params, NUM_OPTIONS, oh3, ow3)

    # Synthetic "pixel" observations in [0, 255).
    x = (jax.random.uniform(kx, (B, C, H, W)) * 255.0).astype(jnp.float32)

    fwd = jax.jit(functools.partial(manager_forward, num_options=NUM_OPTIONS))
    option_logits, value = fwd(kparams, x)
    jax.block_until_ready((option_logits, value))

    assert option_logits.shape == (B, NUM_OPTIONS)
    assert value.shape == (B, 1)

    # Sanity check against a pure-JAX f32 reference (bf16 MXU inputs + tanh-GELU
    # introduce only small numerical noise; a layout/permutation bug would not).
    ref_logits, ref_value = reference_forward(pt_params, x, NUM_OPTIONS)
    err = max(float(jnp.max(jnp.abs(option_logits - ref_logits))),
              float(jnp.max(jnp.abs(value - ref_value))))
    assert err < 2e-2, f"mismatch vs reference: max abs err = {err}"

    print("KERNEL_OK")
</pallas_src>

<mosaic_0001>
module attributes {stable_mosaic.version = 11 : i64} {
  func.func @_mm_bias_act_kernel(%arg0: i32, %arg1: memref<128x256xbf16, #tpu.memory_space<vmem>>, %arg2: memref<256x128xbf16, #tpu.memory_space<vmem>>, %arg3: memref<1x128xf32, #tpu.memory_space<vmem>>, %arg4: memref<128x128xbf16, #tpu.memory_space<vmem>>) attributes {dimension_semantics = [#tpu.dimension_semantics<parallel>], iteration_bounds = array<i64: 1>, scalar_prefetch = 0 : i64, scratch_operands = 0 : i64, tpu.core_type = #tpu.core_type<tc>, window_params = [{transform_indices = @transform_0, window_bounds = array<i64: 128, 256>}, {pipeline_mode = #tpu.pipeline_mode<synchronous>, transform_indices = @transform_1, window_bounds = array<i64: 256, 128>}, {pipeline_mode = #tpu.pipeline_mode<synchronous>, transform_indices = @transform_2, window_bounds = array<i64: 1, 128>}, {transform_indices = @transform_3, window_bounds = array<i64: 128, 128>}]} {
    %c0 = arith.constant 0 : index
    %c0_0 = arith.constant 0 : index
    %0 = vector.load %arg1[%c0, %c0_0] : memref<128x256xbf16, #tpu.memory_space<vmem>>, vector<128x256xbf16>
    %c0_1 = arith.constant 0 : index
    %c0_2 = arith.constant 0 : index
    %1 = vector.load %arg2[%c0_1, %c0_2] : memref<256x128xbf16, #tpu.memory_space<vmem>>, vector<256x128xbf16>
    %cst = arith.constant dense<0.000000e+00> : vector<128x128xf32>
    %2 = tpu.matmul %0, %1, %cst {dimension_numbers = #tpu.dot_dimension_numbers<[1], [0], [0], [1], [0, 0, 1, 1], [], []>} : vector<128x256xbf16>, vector<256x128xbf16>, vector<128x128xf32> -> vector<128x128xf32>
    %c0_3 = arith.constant 0 : index
    %c0_4 = arith.constant 0 : index
    %3 = vector.load %arg3[%c0_3, %c0_4] : memref<1x128xf32, #tpu.memory_space<vmem>>, vector<1x128xf32>
    %4 = vector.broadcast %3 : vector<1x128xf32> to vector<128x128xf32>
    %5 = arith.addf %2, %4 : vector<128x128xf32>
    %cst_5 = arith.constant 5.000000e-01 : f32
    %6 = vector.broadcast %cst_5 : f32 to vector<128x128xf32>
    %7 = arith.mulf %6, %5 : vector<128x128xf32>
    %8 = arith.mulf %5, %5 : vector<128x128xf32>
    %9 = arith.mulf %8, %5 : vector<128x128xf32>
    %cst_6 = arith.constant 4.471500e-02 : f32
    %10 = vector.broadcast %cst_6 : f32 to vector<128x128xf32>
    %11 = arith.mulf %10, %9 : vector<128x128xf32>
    %12 = arith.addf %5, %11 : vector<128x128xf32>
    %cst_7 = arith.constant 0.797884583 : f32
    %13 = vector.broadcast %cst_7 : f32 to vector<128x128xf32>
    %14 = arith.mulf %13, %12 : vector<128x128xf32>
    %15 = math.tanh %14 : vector<128x128xf32>
    %cst_8 = arith.constant 1.000000e+00 : f32
    %16 = vector.broadcast %cst_8 : f32 to vector<128x128xf32>
    %17 = arith.addf %16, %15 : vector<128x128xf32>
    %18 = arith.mulf %7, %17 : vector<128x128xf32>
    %19 = arith.truncf %18 : vector<128x128xf32> to vector<128x128xbf16>
    %c0_9 = arith.constant 0 : index
    %c0_10 = arith.constant 0 : index
    %20 = vector.load %arg4[%c0_9, %c0_10] : memref<128x128xbf16, #tpu.memory_space<vmem>>, vector<128x128xbf16>
    tpu.vector_store %arg4[%c0_9, %c0_10], %19 {strides = array<i32>} : memref<128x128xbf16, #tpu.memory_space<vmem>>, vector<128x128xbf16>,
    return
  }
  func.func @transform_0(%arg0: i32) -> (i32, i32) {
    %c0_i32 = arith.constant 0 : i32
    %c0_i32_0 = arith.constant 0 : i32
    return %arg0, %c0_i32 : i32, i32
  }
  func.func @transform_1(%arg0: i32) -> (i32, i32) {
    %c0_i32 = arith.constant 0 : i32
    %c0_i32_0 = arith.constant 0 : i32
    %c0_i32_1 = arith.constant 0 : i32
    return %c0_i32, %c0_i32_0 : i32, i32
  }
  func.func @transform_2(%arg0: i32) -> (i32, i32) {
    %c0_i32 = arith.constant 0 : i32
    %c0_i32_0 = arith.constant 0 : i32
    %c0_i32_1 = arith.constant 0 : i32
    return %c0_i32, %c0_i32_0 : i32, i32
  }
  func.func @transform_3(%arg0: i32) -> (i32, i32) {
    %c0_i32 = arith.constant 0 : i32
    %c0_i32_0 = arith.constant 0 : i32
    return %arg0, %c0_i32 : i32, i32
  }
}

module attributes {stable_mosaic.version = 11 : i64} {
  func.func @_mm_bias_act_kernel(%arg0: i32, %arg1: memref<18x2048xbf16, #tpu.memory_space<vmem>>, %arg2: memref<2048x128xbf16, #tpu.memory_space<vmem>>, %arg3: memref<1x128xf32, #tpu.memory_space<vmem>>, %arg4: memref<18x128xbf16, #tpu.memory_space<vmem>>) attributes {dimension_semantics = [#tpu.dimension_semantics<parallel>], iteration_bounds = array<i64: 1>, scalar_prefetch = 0 : i64, scratch_operands = 0 : i64, tpu.core_type = #tpu.core_type<tc>, window_params = [{transform_indices = @transform_0, window_bounds = array<i64: 18, 2048>}, {pipeline_mode = #tpu.pipeline_mode<synchronous>, transform_indices = @transform_1, window_bounds = array<i64: 2048, 128>}, {pipeline_mode = #tpu.pipeline_mode<synchronous>, transform_indices = @transform_2, window_bounds = array<i64: 1, 128>}, {transform_indices = @transform_3, window_bounds = array<i64: 18, 128>}]} {
    %c0 = arith.constant 0 : index
    %c0_0 = arith.constant 0 : index
    %0 = vector.load %arg1[%c0, %c0_0] : memref<18x2048xbf16, #tpu.memory_space<vmem>>, vector<18x2048xbf16>
    %c0_1 = arith.constant 0 : index
    %c0_2 = arith.constant 0 : index
    %1 = vector.load %arg2[%c0_1, %c0_2] : memref<2048x128xbf16, #tpu.memory_space<vmem>>, vector<2048x128xbf16>
    %cst = arith.constant dense<0.000000e+00> : vector<18x128xf32>
    %2 = tpu.matmul %0, %1, %cst {dimension_numbers = #tpu.dot_dimension_numbers<[1], [0], [0], [1], [0, 0, 1, 1], [], []>} : vector<18x2048xbf16>, vector<2048x128xbf16>, vector<18x128xf32> -> vector<18x128xf32>
    %c0_3 = arith.constant 0 : index
    %c0_4 = arith.constant 0 : index
    %3 = vector.load %arg3[%c0_3, %c0_4] : memref<1x128xf32, #tpu.memory_space<vmem>>, vector<1x128xf32>
    %4 = vector.broadcast %3 : vector<1x128xf32> to vector<18x128xf32>
    %5 = arith.addf %2, %4 : vector<18x128xf32>
    %cst_5 = arith.constant 5.000000e-01 : f32
    %6 = vector.broadcast %cst_5 : f32 to vector<18x128xf32>
    %7 = arith.mulf %6, %5 : vector<18x128xf32>
    %8 = arith.mulf %5, %5 : vector<18x128xf32>
    %9 = arith.mulf %8, %5 : vector<18x128xf32>
    %cst_6 = arith.constant 4.471500e-02 : f32
    %10 = vector.broadcast %cst_6 : f32 to vector<18x128xf32>
    %11 = arith.mulf %10, %9 : vector<18x128xf32>
    %12 = arith.addf %5, %11 : vector<18x128xf32>
    %cst_7 = arith.constant 0.797884583 : f32
    %13 = vector.broadcast %cst_7 : f32 to vector<18x128xf32>
    %14 = arith.mulf %13, %12 : vector<18x128xf32>
    %15 = math.tanh %14 : vector<18x128xf32>
    %cst_8 = arith.constant 1.000000e+00 : f32
    %16 = vector.broadcast %cst_8 : f32 to vector<18x128xf32>
    %17 = arith.addf %16, %15 : vector<18x128xf32>
    %18 = arith.mulf %7, %17 : vector<18x128xf32>
    %19 = arith.truncf %18 : vector<18x128xf32> to vector<18x128xbf16>
    %c0_9 = arith.constant 0 : index
    %c0_10 = arith.constant 0 : index
    %20 = vector.load %arg4[%c0_9, %c0_10] : memref<18x128xbf16, #tpu.memory_space<vmem>>, vector<18x128xbf16>
    tpu.vector_store %arg4[%c0_9, %c0_10], %19 {strides = array<i32>} : memref<18x128xbf16, #tpu.memory_space<vmem>>, vector<18x128xbf16>,
    return
  }
  func.func @transform_0(%arg0: i32) -> (i32, i32) {
    %c0_i32 = arith.constant 0 : i32
    %c0_i32_0 = arith.constant 0 : i32
    return %arg0, %c0_i32 : i32, i32
  }
  func.func @transform_1(%arg0: i32) -> (i32, i32) {
    %c0_i32 = arith.constant 0 : i32
    %c0_i32_0 = arith.constant 0 : i32
    %c0_i32_1 = arith.constant 0 : i32
    return %c0_i32, %c0_i32_0 : i32, i32
  }
  func.func @transform_2(%arg0: i32) -> (i32, i32) {
    %c0_i32 = arith.constant 0 : i32
    %c0_i32_0 = arith.constant 0 : i32
    %c0_i32_1 = arith.constant 0 : i32
    return %c0_i32, %c0_i32_0 : i32, i32
  }
  func.func @transform_3(%arg0: i32) -> (i32, i32) {
    %c0_i32 = arith.constant 0 : i32
    %c0_i32_0 = arith.constant 0 : i32
    return %arg0, %c0_i32 : i32, i32
  }
}

module attributes {stable_mosaic.version = 11 : i64} {
  func.func @_fused_conv3_heads_kernel(%arg0: memref<2x1152xbf16, #tpu.memory_space<vmem>>, %arg1: memref<1152x64xbf16, #tpu.memory_space<vmem>>, %arg2: memref<1x64xf32, #tpu.memory_space<vmem>>, %arg3: memref<64x1024xbf16, #tpu.memory_space<vmem>>, %arg4: memref<1x1024xf32, #tpu.memory_space<vmem>>, %arg5: memref<1024x128xbf16, #tpu.memory_space<vmem>>, %arg6: memref<1x128xf32, #tpu.memory_space<vmem>>, %arg7: memref<2x128xf32, #tpu.memory_space<vmem>>) attributes {dimension_semantics = [], scalar_prefetch = 0 : i64, scratch_operands = 0 : i64, tpu.core_type = #tpu.core_type<tc>} {
    %c0 = arith.constant 0 : index
    %c0_0 = arith.constant 0 : index
    %0 = vector.load %arg0[%c0, %c0_0] : memref<2x1152xbf16, #tpu.memory_space<vmem>>, vector<2x1152xbf16>
    %c0_1 = arith.constant 0 : index
    %c0_2 = arith.constant 0 : index
    %1 = vector.load %arg1[%c0_1, %c0_2] : memref<1152x64xbf16, #tpu.memory_space<vmem>>, vector<1152x64xbf16>
    %cst = arith.constant dense<0.000000e+00> : vector<2x64xf32>
    %2 = tpu.matmul %0, %1, %cst {dimension_numbers = #tpu.dot_dimension_numbers<[1], [0], [0], [1], [0, 0, 1, 1], [], []>} : vector<2x1152xbf16>, vector<1152x64xbf16>, vector<2x64xf32> -> vector<2x64xf32>
    %c0_3 = arith.constant 0 : index
    %c0_4 = arith.constant 0 : index
    %3 = vector.load %arg2[%c0_3, %c0_4] : memref<1x64xf32, #tpu.memory_space<vmem>>, vector<1x64xf32>
    %4 = vector.broadcast %3 : vector<1x64xf32> to vector<2x64xf32>
    %5 = arith.addf %2, %4 : vector<2x64xf32>
    %cst_5 = arith.constant 5.000000e-01 : f32
    %6 = vector.broadcast %cst_5 : f32 to vector<2x64xf32>
    %7 = arith.mulf %6, %5 : vector<2x64xf32>
    %8 = arith.mulf %5, %5 : vector<2x64xf32>
    %9 = arith.mulf %8, %5 : vector<2x64xf32>
    %cst_6 = arith.constant 4.471500e-02 : f32
    %10 = vector.broadcast %cst_6 : f32 to vector<2x64xf32>
    %11 = arith.mulf %10, %9 : vector<2x64xf32>
    %12 = arith.addf %5, %11 : vector<2x64xf32>
    %cst_7 = arith.constant 0.797884583 : f32
    %13 = vector.broadcast %cst_7 : f32 to vector<2x64xf32>
    %14 = arith.mulf %13, %12 : vector<2x64xf32>
    %15 = math.tanh %14 : vector<2x64xf32>
    %cst_8 = arith.constant 1.000000e+00 : f32
    %16 = vector.broadcast %cst_8 : f32 to vector<2x64xf32>
    %17 = arith.addf %16, %15 : vector<2x64xf32>
    %18 = arith.mulf %7, %17 : vector<2x64xf32>
    %19 = arith.truncf %18 : vector<2x64xf32> to vector<2x64xbf16>
    %c0_9 = arith.constant 0 : index
    %c0_10 = arith.constant 0 : index
    %20 = vector.load %arg3[%c0_9, %c0_10] : memref<64x1024xbf16, #tpu.memory_space<vmem>>, vector<64x1024xbf16>
    %cst_11 = arith.constant dense<0.000000e+00> : vector<2x1024xf32>
    %21 = tpu.matmul %19, %20, %cst_11 {dimension_numbers = #tpu.dot_dimension_numbers<[1], [0], [0], [1], [0, 0, 1, 1], [], []>} : vector<2x64xbf16>, vector<64x1024xbf16>, vector<2x1024xf32> -> vector<2x1024xf32>
    %c0_12 = arith.constant 0 : index
    %c0_13 = arith.constant 0 : index
    %22 = vector.load %arg4[%c0_12, %c0_13] : memref<1x1024xf32, #tpu.memory_space<vmem>>, vector<1x1024xf32>
    %23 = vector.broadcast %22 : vector<1x1024xf32> to vector<2x1024xf32>
    %24 = arith.addf %21, %23 : vector<2x1024xf32>
    %cst_14 = arith.constant 0.000000e+00 : f32
    %25 = vector.broadcast %cst_14 : f32 to vector<2x1024xf32>
    %26 = arith.maximumf %24, %25 : vector<2x1024xf32>
    %27 = arith.truncf %26 : vector<2x1024xf32> to vector<2x1024xbf16>
    %c0_15 = arith.constant 0 : index
    %c0_16 = arith.constant 0 : index
    %28 = vector.load %arg5[%c0_15, %c0_16] : memref<1024x128xbf16, #tpu.memory_space<vmem>>, vector<1024x128xbf16>
    %cst_17 = arith.constant dense<0.000000e+00> : vector<2x128xf32>
    %29 = tpu.matmul %27, %28, %cst_17 {dimension_numbers = #tpu.dot_dimension_numbers<[1], [0], [0], [1], [0, 0, 1, 1], [], []>} : vector<2x1024xbf16>, vector<1024x128xbf16>, vector<2x128xf32> -> vector<2x128xf32>
    %c0_18 = arith.constant 0 : index
    %c0_19 = arith.constant 0 : index
    %30 = vector.load %arg6[%c0_18, %c0_19] : memref<1x128xf32, #tpu.memory_space<vmem>>, vector<1x128xf32>
    %31 = vector.broadcast %30 : vector<1x128xf32> to vector<2x128xf32>
    %32 = arith.addf %29, %31 : vector<2x128xf32>
    %c0_20 = arith.constant 0 : index
    %c0_21 = arith.constant 0 : index
    %33 = vector.load %arg7[%c0_20, %c0_21] : memref<2x128xf32, #tpu.memory_space<vmem>>, vector<2x128xf32>
    tpu.vector_store %arg7[%c0_20, %c0_21], %32 {strides = array<i32>} : memref<2x128xf32, #tpu.memory_space<vmem>>, vector<2x128xf32>,
    return
  }
}

</mosaic_0001>

<bundles_post_ra>
// kernel: manager_forward.3
= control target key start
LH: loop header
LB: loop body
LE: loop exit
PB: predicated region body
PF: predicated region fallthrough
CT: control target
= control target key end

     0   :  { %s1108_s1 = inlined_call_operand.vmem [shape: bf16[256,128], index: 1, kind: input, shape index: {}]   ;;  %s1109_s0 = inlined_call_operand.vmem [shape: bf16[128,256], index: 0, kind: input, shape index: {}]   ;;  %s1110_s2 = inlined_call_operand.vmem [shape: f32[1,128], index: 2, kind: input, shape index: {}]   ;;  %s1111_s3 = inlined_call_operand.vmem [shape: bf16[128,128], index: 3, kind: output, shape index: {}]  }
   0x1   :  { %v763_v0 = vld [vmem:[%s1108_s1 + $0x78] sm:$0xff]   ;;  %v765_v2 = vld [vmem:[%s1108_s1 + $0x70] sm:$0xff]   ;;  %v767_v4 = vld [vmem:[%s1108_s1 + $0x68] sm:$0xff]  }
   0x2   :  { %v764_v1 = vld [vmem:[%s1108_s1 + $0x38] sm:$0xff]   ;;  %683 = vmatprep.subr.bf16.mxu0 %v763_v0  ;;  %747 = vmatprep.subr.bf16.mxu1 %v763_v0  ;;  %v766_v3 = vld [vmem:[%s1108_s1 + $0x30] sm:$0xff]   ;;  %v768_v5 = vld [vmem:[%s1108_s1 + $0x28] sm:$0xff]  }
   0x3   :  { %684 = vmatpush3.bf16.msra.mxu0 %v764_v1  ;;  %755 = vmatpush3.bf16.msra.mxu1 %v764_v1  ;;  %v769_v6 = vld [vmem:[%s1108_s1 + $0x60] sm:$0xff]   ;;  %v771_v8 = vld [vmem:[%s1108_s1 + $0x58] sm:$0xff]   ;;  %v773_v10 = vld [vmem:[%s1108_s1 + $0x50] sm:$0xff]  }
   0x4   :  { %685 = vmatprep.subr.bf16.mxu0 %v765_v2  ;;  %748 = vmatprep.subr.bf16.mxu1 %v765_v2  ;;  %v770_v7 = vld [vmem:[%s1108_s1 + $0x20] sm:$0xff]   ;;  %v772_v9 = vld [vmem:[%s1108_s1 + $0x18] sm:$0xff]   ;;  %v774_v13 = vld [vmem:[%s1108_s1 + $0x10] sm:$0xff]  }
   0x5   :  { %v781_v11 = vld [vmem:[%s1109_s0 + $0x4] ss:$8 sps:$4 sm:$0xff]   ;;  %v779_v18 = vld [vmem:[%s1109_s0] ss:$8 sps:$4 sm:$0xff]   ;;  %v785_v20 = vld [vmem:[%s1109_s0 + $0x14] ss:$8 sps:$4 sm:$0xff]  }
   0x6   :  { %v784_v12 = vld [vmem:[%s1109_s0 + $0x44] ss:$8 sps:$4 sm:$0xff]   ;;  %278 = vmatprep.mubr.bf16.mxu0 %v781_v11  ;;  %v782_v19 = vld [vmem:[%s1109_s0 + $0x40] ss:$8 sps:$4 sm:$0xff]   ;;  %v787_v21 = vld [vmem:[%s1109_s0 + $0x54] ss:$8 sps:$4 sm:$0xff]  }
   0x7   :  { %686 = vmatpush3.bf16.msra.mxu0 %v766_v3  ;;  %756 = vmatpush3.bf16.msra.mxu1 %v766_v3  ;;  %v775_v14 = vld [vmem:[%s1108_s1 + $0x48] sm:$0xff]   ;;  %v777_v16 = vld [vmem:[%s1108_s1 + $0x40] sm:$0xff]   ;;  %v789_v22 = vld [vmem:[%s1109_s0 + $0x10] ss:$8 sps:$4 sm:$0xff]  }
   0x8   :  { %687 = vmatprep.subr.bf16.mxu0 %v767_v4  ;;  %749 = vmatprep.subr.bf16.mxu1 %v767_v4  ;;  %v776_v15 = vld [vmem:[%s1108_s1 + $0x8] sm:$0xff]   ;;  %v778_v17 = vld [vmem:[%s1108_s1] sm:$0xff]   ;;  %v790_v23 = vld [vmem:[%s1109_s0 + $0x50] ss:$8 sps:$4 sm:$0xff]  }
   0x9   :  { %310 = vmatprep.mubr.bf16.mxu1 %v784_v12  ;;  %v791_v24 = vld [vmem:[%s1109_s0 + $0x24] ss:$8 sps:$4 sm:$0xff]   ;;  %v795_v26 = vld [vmem:[%s1109_s0 + $0x20] ss:$8 sps:$4 sm:$0xff]   ;;  %v797_v28 = vld [vmem:[%s1109_s0 + $0x34] ss:$8 sps:$4 sm:$0xff]  }
   0xa   :  { %v793_v25 = vld [vmem:[%s1109_s0 + $0x64] ss:$8 sps:$4 sm:$0xff]   ;;  %v796_v27 = vld [vmem:[%s1109_s0 + $0x60] ss:$8 sps:$4 sm:$0xff]   ;;  %v799_v29 = vld [vmem:[%s1109_s0 + $0x74] ss:$8 sps:$4 sm:$0xff]  }
   0xb   :  { %688 = vmatpush3.bf16.msra.mxu0 %v768_v5  ;;  %757 = vmatpush3.bf16.msra.mxu1 %v768_v5  ;;  %v801_v30 = vld [vmem:[%s1109_s0 + $0x30] ss:$8 sps:$4 sm:$0xff]   ;;  %v954_v34 = vld [vmem:[%s1110_s2] ss:$0 sm:$0xff] }
   0xc   :  { %689 = vmatprep.subr.bf16.mxu0 %v769_v6  ;;  %750 = vmatprep.subr.bf16.mxu1 %v769_v6  ;;  %v802_v31 = vld [vmem:[%s1109_s0 + $0x70] ss:$8 sps:$4 sm:$0xff]  }
   0xf   :  { %690 = vmatpush3.bf16.msra.mxu0 %v770_v7  ;;  %758 = vmatpush3.bf16.msra.mxu1 %v770_v7 }
  0x10   :  { %691 = vmatprep.subr.bf16.mxu0 %v771_v8  ;;  %751 = vmatprep.subr.bf16.mxu1 %v771_v8 }
  0x13   :  { %692 = vmatpush3.bf16.msra.mxu0 %v772_v9  ;;  %759 = vmatpush3.bf16.msra.mxu1 %v772_v9 }
  0x14   :  { %693 = vmatprep.subr.bf16.mxu0 %v773_v10  ;;  %752 = vmatprep.subr.bf16.mxu1 %v773_v10 }
  0x17   :  { %694 = vmatpush3.bf16.msra.mxu0 %v774_v13  ;;  %760 = vmatpush3.bf16.msra.mxu1 %v774_v13 }
  0x18   :  { %695 = vmatprep.subr.bf16.mxu0 %v775_v14  ;;  %753 = vmatprep.subr.bf16.mxu1 %v775_v14 }
  0x1b   :  { %696 = vmatpush3.bf16.msra.mxu0 %v776_v15  ;;  %761 = vmatpush3.bf16.msra.mxu1 %v776_v15 }
  0x1c   :  { %697 = vmatprep.subr.bf16.mxu0 %v777_v16  ;;  %754 = vmatprep.subr.bf16.mxu1 %v777_v16 }
  0x1f   :  { %698 = vmatpush3.bf16.msra.mxu0 %v778_v17  ;;  %762 = vmatpush3.bf16.msra.mxu1 %v778_v17 }
  0x22   :  { %279 = vmatmul.mubr.bf16.vlgmr.msra.gmra.mxu0 %v779_v18  ;;  %311 = vmatmul.mubr.bf16.vlgmr.msra.gmra.mxu1 %v782_v19 }
  0x23   :  { %286 = vmatprep.mubr.bf16.mxu0 %v785_v20  ;;  %318 = vmatprep.mubr.bf16.mxu1 %v787_v21 }
  0x2a   :  { %287 = vmatmul.mubr.bf16.gmra.mxu0 %v789_v22  ;;  %319 = vmatmul.mubr.bf16.gmra.mxu1 %v790_v23 }
  0x2b   :  { %294 = vmatprep.mubr.bf16.mxu0 %v791_v24  ;;  %326 = vmatprep.mubr.bf16.mxu1 %v793_v25 }
  0x32   :  { %295 = vmatmul.mubr.bf16.gmra.mxu0 %v795_v26  ;;  %327 = vmatmul.mubr.bf16.gmra.mxu1 %v796_v27 }
  0x33   :  { %302 = vmatprep.mubr.bf16.mxu0 %v797_v28  ;;  %334 = vmatprep.mubr.bf16.mxu1 %v799_v29 }
  0x3a   :  { %303 = vmatmul.mubr.bf16.gmra.mxu0 %v801_v30  ;;  %335 = vmatmul.mubr.bf16.gmra.mxu1 %v802_v31 }
  0xe2   :  { %v699_v32 = vpop.f32.mrf.mxu0  ;;  %v723_v33 = vpop.f32.mrf.mxu1 }
  0xe4   :  { %v700_v35 = vpop.f32.mrf.mxu0  ;;  %v724_v36 = vpop.f32.mrf.mxu1 }
  0xe5   :  { %v701_v37 = vadd.f32 %v700_v35, %v699_v32  ;;  %v725_v38 = vadd.f32 %v724_v36, %v723_v33 }
  0xe6   :  { %v702_v39 = vpop.f32.mrf.mxu0  ;;  %v726_v40 = vpop.f32.mrf.mxu1 }
  0xe7   :  { %v957_v41 = vadd.f32 %v701_v37, %v954_v34  ;;  %v960_v42 = vadd.f32 %v725_v38, %v954_v34 }
  0xe8   :  { %v703_v43 = vpop.f32.mrf.mxu0  ;;  %v727_v44 = vpop.f32.mrf.mxu1 }
  0xe9   :  { %v359_v45 = vmul.f32 %v957_v41, %v957_v41  ;;  %v367_v46 = vmul.f32 %v960_v42, %v960_v42  ;;  %v704_v47 = vadd.f32 %v703_v43, %v702_v39  ;;  %v728_v48 = vadd.f32 %v727_v44, %v726_v40 }
  0xea   :  { %v705_v49 = vpop.f32.mrf.mxu0  ;;  %v729_v50 = vpop.f32.mrf.mxu1 }
  0xeb   :  { %v375_v51 = vmul.f32 %v359_v45, %v957_v41  ;;  %v383_v52 = vmul.f32 %v367_v46, %v960_v42  ;;  %v969_v53 = vadd.f32 %v704_v47, %v954_v34  ;;  %v972_v54 = vadd.f32 %v728_v48, %v954_v34 }
  0xec   :  { %v706_v55 = vpop.f32.mrf.mxu0  ;;  %v730_v56 = vpop.f32.mrf.mxu1 }
  0xed   :  { %v391_v57 = vmul.f32 0.044715, %v375_v51  ;;  %v399_v58 = vmul.f32 0.044715, %v383_v52  ;;  %v707_v59 = vadd.f32 %v706_v55, %v705_v49  ;;  %v731_v60 = vadd.f32 %v730_v56, %v729_v50 }
  0xee   :  { %v360_v61 = vmul.f32 %v969_v53, %v969_v53  ;;  %v368_v62 = vmul.f32 %v972_v54, %v972_v54  ;;  %v708_v63 = vpop.f32.mrf.mxu0  ;;  %v732_v0 = vpop.f32.mrf.mxu1 }
  0xef   :  { %v407_v1 = vadd.f32 %v391_v57, %v957_v41  ;;  %v415_v2 = vadd.f32 %v399_v58, %v960_v42  ;;  %v981_v3 = vadd.f32 %v707_v59, %v954_v34  ;;  %v984_v4 = vadd.f32 %v731_v60, %v954_v34 }
  0xf0   :  { %v376_v5 = vmul.f32 %v360_v61, %v969_v53  ;;  %v384_v6 = vmul.f32 %v368_v62, %v972_v54  ;;  %v709_v7 = vpop.f32.mrf.mxu0  ;;  %v733_v8 = vpop.f32.mrf.mxu1 }
  0xf1   :  { %v423_v9 = vmul.f32 0.7978846, %v407_v1  ;;  %v431_v10 = vmul.f32 0.7978846, %v415_v2  ;;  %v361_v11 = vmul.f32 %v981_v3, %v981_v3  ;;  %v369_v14 = vmul.f32 %v984_v4, %v984_v4 }
  0xf2   :  { %v392_v12 = vmul.f32 0.044715, %v376_v5  ;;  %v400_v13 = vmul.f32 0.044715, %v384_v6  ;;  %v711_v15 = vpop.f32.mrf.mxu0  ;;  %v735_v16 = vpop.f32.mrf.mxu1  ;;  %v710_v18 = vadd.f32 %v709_v7, %v708_v63  ;;  %v734_v19 = vadd.f32 %v733_v8, %v732_v0 }
  0xf3   :  { %803 = vtanh.f32 %v423_v9  ;;  %v377_v17 = vmul.f32 %v361_v11, %v981_v3  ;;  %v385_v22 = vmul.f32 %v369_v14, %v984_v4  ;;  %v343_v8 = vmul.f32 0.5, %v957_v41 }
  0xf4   :  { %805 = vtanh.f32 %v431_v10  ;;  %v408_v20 = vadd.f32 %v392_v12, %v969_v53  ;;  %v416_v21 = vadd.f32 %v400_v13, %v972_v54  ;;  %v712_v23 = vpop.f32.mrf.mxu0  ;;  %v736_v24 = vpop.f32.mrf.mxu1  ;;  %v997_v26 = vadd.f32 %v710_v18, %v954_v34 }
  0xf5   :  { %v393_v25 = vmul.f32 0.044715, %v377_v17  ;;  %v1000_v27 = vadd.f32 %v734_v19, %v954_v34  ;;  %v713_v28 = vadd.f32 %v712_v23, %v711_v15  ;;  %v401_v31 = vmul.f32 0.044715, %v385_v22 }
  0xf6   :  { %v424_v29 = vmul.f32 0.7978846, %v408_v20  ;;  %v432_v30 = vmul.f32 0.7978846, %v416_v21  ;;  %v737_v32 = vadd.f32 %v736_v24, %v735_v16  ;;  %v714_v33 = vpop.f32.mrf.mxu0  ;;  %v738_v35 = vpop.f32.mrf.mxu1  ;;  %v362_v37 = vmul.f32 %v997_v26, %v997_v26 }
  0xf7   :  { %v409_v36 = vadd.f32 %v393_v25, %v981_v3  ;;  %v417_v38 = vadd.f32 %v401_v31, %v984_v4  ;;  %v370_v39 = vmul.f32 %v1000_v27, %v1000_v27  ;;  %v1009_v40 = vadd.f32 %v713_v28, %v954_v34 }
  0xf8   :  { %807 = vtanh.f32 %v424_v29  ;;  %v715_v43 = vpop.f32.mrf.mxu0  ;;  %v739_v44 = vpop.f32.mrf.mxu1  ;;  %v378_v46 = vmul.f32 %v362_v37, %v997_v26  ;;  %v1013_v47 = vadd.f32 %v737_v32, %v954_v34  ;;  %v351_v25 = vmul.f32 0.5, %v960_v42 }
  0xf9   :  { %809 = vtanh.f32 %v432_v30  ;;  %v425_v45 = vmul.f32 0.7978846, %v409_v36  ;;  %v433_v48 = vmul.f32 0.7978846, %v417_v38  ;;  %v386_v49 = vmul.f32 %v370_v39, %v1000_v27 }
  0xfa   :  { %v363_v50 = vmul.f32 %v1009_v40, %v1009_v40  ;;  %v717_v51 = vpop.f32.mrf.mxu0  ;;  %v741_v52 = vpop.f32.mrf.mxu1  ;;  %v394_v55 = vmul.f32 0.044715, %v378_v46  ;;  %v371_v56 = vmul.f32 %v1013_v47, %v1013_v47  ;;  %v716_v59 = vadd.f32 %v715_v43, %v714_v33 }
  0xfb   :  { %811 = vtanh.f32 %v425_v45  ;;  %v402_v57 = vmul.f32 0.044715, %v386_v49  ;;  %v740_v63 = vadd.f32 %v739_v44, %v738_v35  ;;  %v344_v28 = vmul.f32 0.5, %v969_v53 }
  0xfc   :  { %v379_v58 = vmul.f32 %v363_v50, %v1009_v40  ;;  %v718_v60 = vpop.f32.mrf.mxu0  ;;  %v410_v61 = vadd.f32 %v394_v55, %v997_v26  ;;  %v387_v62 = vmul.f32 %v371_v56, %v1013_v47  ;;  %813 = vtanh.f32 %v433_v48  ;;  %v742_v6 = vpop.f32.mrf.mxu1 }
  0xfd   :  { %v719_v0 = vadd.f32 %v718_v60, %v717_v51  ;;  %v418_v1 = vadd.f32 %v402_v57, %v1000_v27  ;;  %v1025_v5 = vadd.f32 %v716_v59, %v954_v34  ;;  %v1029_v11 = vadd.f32 %v740_v63, %v954_v34 }
  0xfe   :  { %v395_v2 = vmul.f32 0.044715, %v379_v58  ;;  %v720_v7 = vpop.f32.mrf.mxu0  ;;  %v426_v9 = vmul.f32 0.7978846, %v410_v61  ;;  %v403_v10 = vmul.f32 0.044715, %v387_v62  ;;  %v743_v19 = vadd.f32 %v742_v6, %v741_v52  ;;  %v744_v23 = vpop.f32.mrf.mxu1 }
  0xff   :  { %v434_v13 = vmul.f32 0.7978846, %v418_v1  ;;  %v364_v15 = vmul.f32 %v1025_v5, %v1025_v5  ;;  %v1035_v16 = vadd.f32 %v719_v0, %v954_v34  ;;  %v372_v30 = vmul.f32 %v1029_v11, %v1029_v11 }
 0x100   :  { %v804_v12 = vpop.eup %803  ;;  %v411_v14 = vadd.f32 %v395_v2, %v1009_v40  ;;  %815 = vtanh.f32 %v426_v9  ;;  %v419_v41 = vadd.f32 %v403_v10, %v1013_v47  ;;  %v721_v24 = vpop.f32.mrf.mxu0  ;;  %v352_v32 = vmul.f32 0.5, %v972_v54 }
 0x101   :  { %v806_v17 = vpop.eup %805  ;;  %v455_v18 = vadd.f32 1.0, %v804_v12  ;;  %817 = vtanh.f32 %v434_v13  ;;  %v380_v22 = vmul.f32 %v364_v15, %v1025_v5  ;;  %v365_v35 = vmul.f32 %v1035_v16, %v1035_v16  ;;  %v745_v54 = vpop.f32.mrf.mxu1 }
 0x102   :  { %v463_v20 = vadd.f32 1.0, %v806_v17  ;;  %v427_v21 = vmul.f32 0.7978846, %v411_v14  ;;  %v435_v29 = vmul.f32 0.7978846, %v419_v41  ;;  %v388_v38 = vmul.f32 %v372_v30, %v1029_v11 }
 0x103   :  { %v471_v31 = vmul.f32 %v455_v18, %v343_v8  ;;  %v396_v33 = vmul.f32 0.044715, %v380_v22  ;;  %v1048_v39 = vadd.f32 %v743_v19, %v954_v34  ;;  %v722_v42 = vadd.f32 %v721_v24, %v720_v7 }
 0x104   :  { %v479_v37 = vmul.f32 %v463_v20, %v351_v25  ;;  %819 = vtanh.f32 %v427_v21  ;;  %v381_v45 = vmul.f32 %v365_v35, %v1035_v16  ;;  %v404_v48 = vmul.f32 0.044715, %v388_v38 }
 0x105   :  { %v808_v36 = vpop.eup %807  ;;  %v412_v44 = vadd.f32 %v396_v33, %v1025_v5  ;;  %821 = vtanh.f32 %v435_v29  ;;  %v373_v49 = vmul.f32 %v1048_v39, %v1048_v39  ;;  %v1055_v55 = vadd.f32 %v722_v42, %v954_v34 }
 0x106   :  { %v810_v53 = vpop.eup %809  ;;  %v456_v43 = vadd.f32 1.0, %v808_v36  ;;  %v397_v52 = vmul.f32 0.044715, %v381_v45  ;;  %v420_v58 = vadd.f32 %v404_v48, %v1029_v11  ;;  %v746_v60 = vadd.f32 %v745_v54, %v744_v23 }
 0x107   :  { %v464_v46 = vadd.f32 1.0, %v810_v53  ;;  %v428_v51 = vmul.f32 0.7978846, %v412_v44  ;;  %v389_v59 = vmul.f32 %v373_v49, %v1048_v39  ;;  %v366_v6 = vmul.f32 %v1055_v55, %v1055_v55 }
 0x108   :  { %v472_v50 = vmul.f32 %v456_v43, %v344_v28  ;;  %v812_v56 = vpop.eup %811  ;;  %v413_v62 = vadd.f32 %v397_v52, %v1035_v16  ;;  %v436_v1 = vmul.f32 0.7978846, %v420_v58  ;;  %v1070_v9 = vadd.f32 %v746_v60, %v954_v34 }
 0x109   :  { %v480_v57 = vmul.f32 %v464_v46, %v352_v32  ;;  %823 = vtanh.f32 %v428_v51  ;;  %v814_v63 = vpop.eup %813  ;;  %v405_v2 = vmul.f32 0.044715, %v389_v59  ;;  %v457_v7 = vadd.f32 1.0, %v812_v56 }
 0x10a   :  { %v639_v61 = vpack.c.bf16 %v472_v50, %v471_v31  ;;  %825 = vtanh.f32 %v436_v1  ;;  %v465_v12 = vadd.f32 1.0, %v814_v63  ;;  %v429_v13 = vmul.f32 0.7978846, %v413_v62 }
 0x10b   :  { %v659_v0 = vpack.c.bf16 %v480_v57, %v479_v37  ;;  %v421_v8 = vadd.f32 %v405_v2, %v1048_v39  ;;  %v382_v14 = vmul.f32 %v366_v6, %v1055_v55  ;;  %v345_v17 = vmul.f32 0.5, %v981_v3 }
 0x10c   :  { %640 = vst [vmem:[%s1111_s3] sm:$0xff] %v639_v61   ;;  %v346_v18 = vmul.f32 0.5, %v997_v26  ;;  %v374_v19 = vmul.f32 %v1070_v9, %v1070_v9  ;;  %v353_v20 = vmul.f32 0.5, %v984_v4  ;;  %v354_v21 = vmul.f32 0.5, %v1000_v27 }
 0x10d   :  { %679 = vst [vmem:[%s1111_s3 + $0x20] sm:$0xff] %v659_v0   ;;  %v816_v10 = vpop.eup %815  ;;  %v398_v22 = vmul.f32 0.044715, %v382_v14  ;;  %v473_v23 = vmul.f32 %v457_v7, %v345_v17  ;;  %v437_v25 = vmul.f32 0.7978846, %v421_v8  ;;  %827 = vtanh.f32 %v429_v13 }
 0x10e   :  { %v818_v15 = vpop.eup %817  ;;  %v458_v41 = vadd.f32 1.0, %v816_v10  ;;  %v390_v28 = vmul.f32 %v374_v19, %v1070_v9  ;;  %v481_v29 = vmul.f32 %v465_v12, %v353_v20  ;;  %v347_v42 = vmul.f32 0.5, %v1009_v40 }
 0x10f   :  { %v466_v34 = vadd.f32 1.0, %v818_v15  ;;  %v414_v3 = vadd.f32 %v398_v22, %v1055_v55  ;;  %829 = vtanh.f32 %v437_v25  ;;  %v348_v53 = vmul.f32 0.5, %v1025_v5 }
 0x110   :  { %v474_v24 = vmul.f32 %v458_v41, %v346_v18  ;;  %v406_v32 = vmul.f32 0.044715, %v390_v28  ;;  %v355_v48 = vmul.f32 0.5, %v1013_v47  ;;  %v356_v49 = vmul.f32 0.5, %v1029_v11 }
 0x111   :  { %v482_v30 = vmul.f32 %v466_v34, %v354_v21  ;;  %v820_v26 = vpop.eup %819  ;;  %v430_v4 = vmul.f32 0.7978846, %v414_v3  ;;  %v349_v47 = vmul.f32 0.5, %v1035_v16  ;;  %v350_v11 = vmul.f32 0.5, %v1055_v55 }
 0x112   :  { %v644_v31 = vpack.c.bf16 %v474_v24, %v473_v23  ;;  %v822_v33 = vpop.eup %821  ;;  %v422_v27 = vadd.f32 %v406_v32, %v1070_v9  ;;  %v459_v36 = vadd.f32 1.0, %v820_v26  ;;  %v357_v1 = vmul.f32 0.5, %v1048_v39 }
 0x113   :  { %v664_v35 = vpack.c.bf16 %v482_v30, %v481_v29  ;;  %831 = vtanh.f32 %v430_v4  ;;  %v467_v44 = vadd.f32 1.0, %v822_v33  ;;  %v358_v2 = vmul.f32 0.5, %v1070_v9 }
 0x114   :  { %676 = vst [vmem:[%s1111_s3 + $0x8] sm:$0xff] %v644_v31   ;;  %v438_v38 = vmul.f32 0.7978846, %v422_v27  ;;  %v475_v54 = vmul.f32 %v459_v36, %v347_v42 }
 0x115   :  { %680 = vst [vmem:[%s1111_s3 + $0x28] sm:$0xff] %v664_v35   ;;  %v483_v52 = vmul.f32 %v467_v44, %v355_v48 }
 0x116   :  { %v824_v37 = vpop.eup %823  ;;  %833 = vtanh.f32 %v438_v38 }
 0x117   :  { %v460_v43 = vadd.f32 1.0, %v824_v37  ;;  %v826_v45 = vpop.eup %825 }
 0x118   :  { %v468_v50 = vadd.f32 1.0, %v826_v45 }
 0x119   :  { %v476_v46 = vmul.f32 %v460_v43, %v348_v53 }
 0x11a   :  { %v484_v56 = vmul.f32 %v468_v50, %v356_v49  ;;  %v828_v40 = vpop.eup %827 }
 0x11b   :  { %v649_v51 = vpack.c.bf16 %v476_v46, %v475_v54  ;;  %v461_v58 = vadd.f32 1.0, %v828_v40 }
 0x11c   :  { %v669_v5 = vpack.c.bf16 %v484_v56, %v483_v52  ;;  %v830_v57 = vpop.eup %829 }
 0x11d   :  { %677 = vst [vmem:[%s1111_s3 + $0x10] sm:$0xff] %v649_v51   ;;  %v469_v61 = vadd.f32 1.0, %v830_v57  ;;  %v477_v63 = vmul.f32 %v461_v58, %v349_v47 }
 0x11e   :  { %681 = vst [vmem:[%s1111_s3 + $0x30] sm:$0xff] %v669_v5  }
 0x11f   :  { %v485_v8 = vmul.f32 %v469_v61, %v357_v1 }
 0x120   :  { %v832_v59 = vpop.eup %831 }
 0x121   :  { %v462_v60 = vadd.f32 1.0, %v832_v59 }
 0x123   :  { %v834_v62 = vpop.eup %833  ;;  %v478_v0 = vmul.f32 %v462_v60, %v350_v11 }
 0x124   :  { %v470_v6 = vadd.f32 1.0, %v834_v62 }
 0x125   :  { %v654_v7 = vpack.c.bf16 %v478_v0, %v477_v63 }
 0x126   :  { %v486_v10 = vmul.f32 %v470_v6, %v358_v2 }
 0x127   :  { %678 = vst [vmem:[%s1111_s3 + $0x18] sm:$0xff] %v654_v7  }
 0x128   :  { %v674_v16 = vpack.c.bf16 %v486_v10, %v485_v8 }
 0x12a   :  { %682 = vst [vmem:[%s1111_s3 + $0x38] sm:$0xff] %v674_v16  }

// kernel: manager_forward.4
= control target key start
LH: loop header
LB: loop body
LE: loop exit
PB: predicated region body
PF: predicated region fallthrough
CT: control target
= control target key end

     0   :  { %s2668_s1 = inlined_call_operand.vmem [shape: bf16[2048,128], index: 1, kind: input, shape index: {}]   ;;  %s2669_s0 = inlined_call_operand.vmem [shape: bf16[18,2048], index: 0, kind: input, shape index: {}]   ;;  %s2670_s2 = inlined_call_operand.vmem [shape: f32[1,128], index: 2, kind: input, shape index: {}]   ;;  %s2671_s3 = inlined_call_operand.vmem [shape: bf16[18,128], index: 3, kind: output, shape index: {}]  }
   0x1   :  { %v2033_v0 = vld [vmem:[%s2668_s1 + $0x78] sm:$0xff]   ;;  %v2037_v4 = vld [vmem:[%s2668_s1 + $0x70] sm:$0xff]   ;;  %v2041_v8 = vld [vmem:[%s2668_s1 + $0x68] sm:$0xff]  }
   0x2   :  { %v2034_v1 = vld [vmem:[%s2668_s1 + $0xf8] sm:$0xff]   ;;  %1809 = vmatprep.subr.bf16.mxu0 %v2033_v0  ;;  %v2038_v5 = vld [vmem:[%s2668_s1 + $0xf0] sm:$0xff]   ;;  %v2042_v9 = vld [vmem:[%s2668_s1 + $0xe8] sm:$0xff]  }
   0x3   :  { %v2035_v2 = vld [vmem:[%s2668_s1 + $0x38] sm:$0xff]   ;;  %1837 = vmatprep.subr.bf16.mxu1 %v2034_v1  ;;  %v2039_v6 = vld [vmem:[%s2668_s1 + $0x30] sm:$0xff]   ;;  %v2043_v10 = vld [vmem:[%s2668_s1 + $0x28] sm:$0xff]  }
   0x4   :  { %v2036_v3 = vld [vmem:[%s2668_s1 + $0xb8] sm:$0xff]   ;;  %1810 = vmatpush3.bf16.msra.mxu0 %v2035_v2  ;;  %v2040_v7 = vld [vmem:[%s2668_s1 + $0xb0] sm:$0xff]   ;;  %v2044_v11 = vld [vmem:[%s2668_s1 + $0xa8] sm:$0xff]  }
   0x5   :  { %1838 = vmatpush3.bf16.msra.mxu1 %v2036_v3  ;;  %1811 = vmatprep.subr.bf16.mxu0 %v2037_v4  ;;  %v2045_v12 = vld [vmem:[%s2668_s1 + $0x60] sm:$0xff]   ;;  %v2049_v16 = vld [vmem:[%s2668_s1 + $0x58] sm:$0xff]   ;;  %v2053_v20 = vld [vmem:[%s2668_s1 + $0x50] sm:$0xff]  }
   0x6   :  { %1839 = vmatprep.subr.bf16.mxu1 %v2038_v5  ;;  %v2046_v13 = vld [vmem:[%s2668_s1 + $0xe0] sm:$0xff]   ;;  %v2050_v17 = vld [vmem:[%s2668_s1 + $0xd8] sm:$0xff]   ;;  %v2054_v21 = vld [vmem:[%s2668_s1 + $0xd0] sm:$0xff]  }
   0x7   :  { %v2047_v14 = vld [vmem:[%s2668_s1 + $0x20] sm:$0xff]   ;;  %v2051_v18 = vld [vmem:[%s2668_s1 + $0x18] sm:$0xff]   ;;  %v2055_v22 = vld [vmem:[%s2668_s1 + $0x10] sm:$0xff]  }
   0x8   :  { %1812 = vmatpush3.bf16.msra.mxu0 %v2039_v6  ;;  %v2048_v15 = vld [vmem:[%s2668_s1 + $0xa0] sm:$0xff]   ;;  %v2052_v19 = vld [vmem:[%s2668_s1 + $0x98] sm:$0xff]   ;;  %v2056_v23 = vld [vmem:[%s2668_s1 + $0x90] sm:$0xff]  }
   0x9   :  { %1840 = vmatpush3.bf16.msra.mxu1 %v2040_v7  ;;  %1813 = vmatprep.subr.bf16.mxu0 %v2041_v8  ;;  %v2057_v24 = vld [vmem:[%s2668_s1 + $0x48] sm:$0xff]   ;;  %v2061_v28 = vld [vmem:[%s2668_s1 + $0x40] sm:$0xff]   ;;  %v2065_v40 = vld [vmem:[%s2668_s1 + $0x178] sm:$0xff]  }
   0xa   :  { %1841 = vmatprep.subr.bf16.mxu1 %v2042_v9  ;;  %v2058_v25 = vld [vmem:[%s2668_s1 + $0xc8] sm:$0xff]   ;;  %v2062_v29 = vld [vmem:[%s2668_s1 + $0xc0] sm:$0xff]   ;;  %v2066_v41 = vld [vmem:[%s2668_s1 + $0x1f8] sm:$0xff]  }
   0xb   :  { %v2059_v26 = vld [vmem:[%s2668_s1 + $0x8] sm:$0xff]   ;;  %v2063_v30 = vld [vmem:[%s2668_s1] sm:$0xff]   ;;  %v2067_v42 = vld [vmem:[%s2668_s1 + $0x138] sm:$0xff]  }
   0xc   :  { %1814 = vmatpush3.bf16.msra.mxu0 %v2043_v10  ;;  %v2060_v27 = vld [vmem:[%s2668_s1 + $0x88] sm:$0xff]   ;;  %v2064_v31 = vld [vmem:[%s2668_s1 + $0x80] sm:$0xff]   ;;  %v2068_v43 = vld [vmem:[%s2668_s1 + $0x1b8] sm:$0xff]  }
   0xd   :  { %1842 = vmatpush3.bf16.msra.mxu1 %v2044_v11  ;;  %1815 = vmatprep.subr.bf16.mxu0 %v2045_v12  ;;  %v15_v32 = vld [vmem:[%s2669_s0] sm:$0xff]  ;;  %v16_v34 = vld [vmem:[%s2669_s0 + $0x8] sm:$0xff]  ;;  %v2069_v44 = vld [vmem:[%s2668_s1 + $0x170] sm:$0xff]  }
   0xe   :  { %1843 = vmatprep.subr.bf16.mxu1 %v2046_v13  ;;  %v23_v33 = vld [vmem:[%s2669_s0 + $0x40] sm:$0xff]  ;;  %v24_v37 = vld [vmem:[%s2669_s0 + $0x48] sm:$0xff]  ;;  %v2070_v45 = vld [vmem:[%s2668_s1 + $0x1f0] sm:$0xff]  }
   0xf   :  { %v1638_v35 = vcombine.low %v15_v32, %v23_v33  ;;  %v1639_v36 = vcombine.high %v15_v32, %v23_v33  ;;  %v1640_v38 = vcombine.low %v16_v34, %v24_v37  ;;  %v1641_v39 = vcombine.high %v16_v34, %v24_v37  ;;  %v2071_v46 = vld [vmem:[%s2668_s1 + $0x130] sm:$0xff]   ;;  %v2073_v48 = vld [vmem:[%s2668_s1 + $0x168] sm:$0xff]   ;;  %v2077_v52 = vld [vmem:[%s2668_s1 + $0x160] sm:$0xff]  }
  0x10   :  { %1816 = vmatpush3.bf16.msra.mxu0 %v2047_v14  ;;  %v2072_v47 = vld [vmem:[%s2668_s1 + $0x1b0] sm:$0xff]   ;;  %v2074_v49 = vld [vmem:[%s2668_s1 + $0x1e8] sm:$0xff]   ;;  %v2078_v53 = vld [vmem:[%s2668_s1 + $0x1e0] sm:$0xff]  }
  0x11   :  { %1844 = vmatpush3.bf16.msra.mxu1 %v2048_v15  ;;  %1817 = vmatprep.subr.bf16.mxu0 %v2049_v16  ;;  %v2075_v50 = vld [vmem:[%s2668_s1 + $0x128] sm:$0xff]   ;;  %v2079_v54 = vld [vmem:[%s2668_s1 + $0x120] sm:$0xff]   ;;  %v2081_v56 = vld [vmem:[%s2668_s1 + $0x158] sm:$0xff]  }
  0x12   :  { %1845 = vmatprep.subr.bf16.mxu1 %v2050_v17  ;;  %1238 = vmatprep.mubr.bf16.mxu0 %v1639_v36  ;;  %v2076_v51 = vld [vmem:[%s2668_s1 + $0x1a8] sm:$0xff]   ;;  %v2080_v55 = vld [vmem:[%s2668_s1 + $0x1a0] sm:$0xff]   ;;  %v2082_v57 = vld [vmem:[%s2668_s1 + $0x1d8] sm:$0xff]  }
  0x13   :  { %1286 = vmatprep.mubr.bf16.mxu1 %v1641_v39  ;;  %v2083_v58 = vld [vmem:[%s2668_s1 + $0x118] sm:$0xff]   ;;  %v31_v60 = vld [vmem:[%s2669_s0 + $0x80] sm:$0x11]  ;;  %v32_v61 = vld [vmem:[%s2669_s0 + $0x88] sm:$0x11] }
  0x14   :  { %1818 = vmatpush3.bf16.msra.mxu0 %v2051_v18  ;;  %v2084_v59 = vld [vmem:[%s2668_s1 + $0x198] sm:$0xff]   ;;  %v1655_v62 = vcombine.high %v31_v60, %v31_v60  ;;  %v1654_v63 = vcombine.low %v31_v60, %v31_v60  ;;  %v1657_v0 = vcombine.high %v32_v61, %v32_v61  ;;  %v2088_v1 = vld [vmem:[%s2668_s1 + $0x150] sm:$0xff]   ;;  %v1656_v2 = vcombine.low %v32_v61, %v32_v61  ;;  %v2093_v6 = vld [vmem:[%s2668_s1 + $0x148] sm:$0xff]  }
  0x15   :  { %1846 = vmatpush3.bf16.msra.mxu1 %v2052_v19  ;;  %1819 = vmatprep.subr.bf16.mxu0 %v2053_v20  ;;  %v2089_v3 = vld [vmem:[%s2668_s1 + $0x1d0] sm:$0xff]   ;;  %v2094_v7 = vld [vmem:[%s2668_s1 + $0x1c8] sm:$0xff]   ;;  %v2097_v10 = vld [vmem:[%s2668_s1 + $0x140] sm:$0xff]  }
  0x16   :  { %1847 = vmatprep.subr.bf16.mxu1 %v2054_v21  ;;  %v2091_v4 = vld [vmem:[%s2668_s1 + $0x110] sm:$0xff]   ;;  %v2095_v8 = vld [vmem:[%s2668_s1 + $0x108] sm:$0xff]   ;;  %v2098_v11 = vld [vmem:[%s2668_s1 + $0x1c0] sm:$0xff]  }
  0x17   :  { %v2092_v5 = vld [vmem:[%s2668_s1 + $0x190] sm:$0xff]   ;;  %v2096_v9 = vld [vmem:[%s2668_s1 + $0x188] sm:$0xff]   ;;  %v2099_v12 = vld [vmem:[%s2668_s1 + $0x100] sm:$0xff]  }
  0x18   :  { %1820 = vmatpush3.bf16.msra.mxu0 %v2055_v22  ;;  %v2100_v13 = vld [vmem:[%s2668_s1 + $0x180] sm:$0xff]   ;;  %v17_v14 = vld [vmem:[%s2669_s0 + $0x10] sm:$0xff]  ;;  %v18_v16 = vld [vmem:[%s2669_s0 + $0x18] sm:$0xff] }
  0x19   :  { %1848 = vmatpush3.bf16.msra.mxu1 %v2056_v23  ;;  %1821 = vmatprep.subr.bf16.mxu0 %v2057_v24  ;;  %v25_v15 = vld [vmem:[%s2669_s0 + $0x50] sm:$0xff]  ;;  %v26_v19 = vld [vmem:[%s2669_s0 + $0x58] sm:$0xff]  ;;  %v2111_v33 = vld [vmem:[%s2668_s1 + $0x268] sm:$0xff]  }
  0x1a   :  { %1849 = vmatprep.subr.bf16.mxu1 %v2058_v25  ;;  %v1642_v17 = vcombine.low %v17_v14, %v25_v15  ;;  %v1643_v18 = vcombine.high %v17_v14, %v25_v15  ;;  %v1644_v20 = vcombine.low %v18_v16, %v26_v19  ;;  %v1645_v21 = vcombine.high %v18_v16, %v26_v19  ;;  %v2101_v22 = vld [vmem:[%s2668_s1 + $0x278] sm:$0xff]   ;;  %v2112_v34 = vld [vmem:[%s2668_s1 + $0x2e8] sm:$0xff]   ;;  %v19_v60 = vld [vmem:[%s2669_s0 + $0x20] sm:$0xff] }
  0x1b   :  { %v2102_v23 = vld [vmem:[%s2668_s1 + $0x2f8] sm:$0xff]   ;;  %v2114_v37 = vld [vmem:[%s2668_s1 + $0x228] sm:$0xff]   ;;  %v27_v61 = vld [vmem:[%s2669_s0 + $0x60] sm:$0xff] }
  0x1c   :  { %1822 = vmatpush3.bf16.msra.mxu0 %v2059_v26  ;;  %v2103_v24 = vld [vmem:[%s2668_s1 + $0x238] sm:$0xff]   ;;  %v2105_v26 = vld [vmem:[%s2668_s1 + $0x270] sm:$0xff]   ;;  %v2115_v39 = vld [vmem:[%s2668_s1 + $0x2a8] sm:$0xff]  }
  0x1d   :  { %1850 = vmatpush3.bf16.msra.mxu1 %v2060_v27  ;;  %1823 = vmatprep.subr.bf16.mxu0 %v2061_v28  ;;  %v2104_v25 = vld [vmem:[%s2668_s1 + $0x2b8] sm:$0xff]   ;;  %v2106_v27 = vld [vmem:[%s2668_s1 + $0x2f0] sm:$0xff]   ;;  %v2147_v15 = vld [vmem:[%s2668_s1 + $0x368] sm:$0xff]  }
  0x1e   :  { %1851 = vmatprep.subr.bf16.mxu1 %v2062_v29  ;;  %v2107_v28 = vld [vmem:[%s2668_s1 + $0x230] sm:$0xff]   ;;  %v2148_v16 = vld [vmem:[%s2668_s1 + $0x3e8] sm:$0xff]  }
  0x1f   :  { %v2108_v29 = vld [vmem:[%s2668_s1 + $0x2b0] sm:$0xff]   ;;  %v2150_v19 = vld [vmem:[%s2668_s1 + $0x328] sm:$0xff]  }
  0x20   :  { %1824 = vmatpush3.bf16.msra.mxu0 %v2063_v30  ;;  %v33_v30 = vld [vmem:[%s2669_s0 + $0x90] sm:$0x11] }
  0x21   :  { %1852 = vmatpush3.bf16.msra.mxu1 %v2064_v31  ;;  %1865 = vmatprep.subr.bf16.mxu0 %v2065_v40  ;;  %v1659_v31 = vcombine.high %v33_v30, %v33_v30  ;;  %v1658_v32 = vcombine.low %v33_v30, %v33_v30  ;;  %v2117_v40 = vld [vmem:[%s2668_s1 + $0x260] sm:$0xff]   ;;  %v2161_v30 = vld [vmem:[%s2668_s1 + $0x350] sm:$0xff]  }
  0x22   :  { %1893 = vmatprep.subr.bf16.mxu1 %v2066_v41  ;;  %v2118_v41 = vld [vmem:[%s2668_s1 + $0x2e0] sm:$0xff]  }
  0x23   :  { %1239 = vmatmul.mubr.bf16.vlgmr.msra.gmra.mxu0 %v1638_v35  ;;  %v34_v35 = vld [vmem:[%s2669_s0 + $0x98] sm:$0x11] }
  0x24   :  { %1287 = vmatmul.mubr.bf16.vlgmr.msra.gmra.mxu1 %v1640_v38  ;;  %1866 = vmatpush3.bf16.msra.mxu0 %v2067_v42  ;;  %v1661_v36 = vcombine.high %v34_v35, %v34_v35  ;;  %v1660_v38 = vcombine.low %v34_v35, %v34_v35  ;;  %v2119_v42 = vld [vmem:[%s2668_s1 + $0x220] sm:$0xff]   ;;  %v2166_v35 = vld [vmem:[%s2668_s1 + $0x3c8] sm:$0xff]  }
  0x25   :  { %1894 = vmatpush3.bf16.msra.mxu1 %v2068_v43  ;;  %1867 = vmatprep.subr.bf16.mxu0 %v2069_v44  ;;  %v2120_v43 = vld [vmem:[%s2668_s1 + $0x2a0] sm:$0xff]   ;;  %v2121_v44 = vld [vmem:[%s2668_s1 + $0x258] sm:$0xff]  }
  0x26   :  { %1895 = vmatprep.subr.bf16.mxu1 %v2070_v45  ;;  %1246 = vmatprep.mubr.bf16.mxu0 %v1655_v62  ;;  %v2122_v45 = vld [vmem:[%s2668_s1 + $0x2d8] sm:$0xff]   ;;  %v20_v62 = vld [vmem:[%s2669_s0 + $0x28] sm:$0xff] }
  0x27   :  { %1294 = vmatprep.mubr.bf16.mxu1 %v1657_v0  ;;  %v1647_v0 = vcombine.high %v19_v60, %v27_v61 }
  0x28   :  { %1868 = vmatpush3.bf16.msra.mxu0 %v2071_v46  ;;  %v2123_v46 = vld [vmem:[%s2668_s1 + $0x218] sm:$0xff]  }
  0x29   :  { %1896 = vmatpush3.bf16.msra.mxu1 %v2072_v47  ;;  %1869 = vmatprep.subr.bf16.mxu0 %v2073_v48  ;;  %v2124_v47 = vld [vmem:[%s2668_s1 + $0x298] sm:$0xff]   ;;  %v2125_v48 = vld [vmem:[%s2668_s1 + $0x250] sm:$0xff]  }
  0x2a   :  { %1897 = vmatprep.subr.bf16.mxu1 %v2074_v49  ;;  %v2126_v49 = vld [vmem:[%s2668_s1 + $0x2d0] sm:$0xff]  }
  0x2b   :  { %1247 = vmatmul.mubr.bf16.gmra.mxu0 %v1654_v63  ;;  %v1646_v63 = vcombine.low %v19_v60, %v27_v61 }
  0x2c   :  { %1870 = vmatpush3.bf16.msra.mxu0 %v2075_v50  ;;  %1295 = vmatmul.mubr.bf16.gmra.mxu1 %v1656_v2  ;;  %v2127_v50 = vld [vmem:[%s2668_s1 + $0x210] sm:$0xff]  }
  0x2d   :  { %1898 = vmatpush3.bf16.msra.mxu1 %v2076_v51  ;;  %1871 = vmatprep.subr.bf16.mxu0 %v2077_v52  ;;  %v2128_v51 = vld [vmem:[%s2668_s1 + $0x290] sm:$0xff]   ;;  %v2129_v52 = vld [vmem:[%s2668_s1 + $0x248] sm:$0xff]  }
  0x2e   :  { %1899 = vmatprep.subr.bf16.mxu1 %v2078_v53  ;;  %1334 = vmatprep.mubr.bf16.mxu0 %v1643_v18  ;;  %v2130_v53 = vld [vmem:[%s2668_s1 + $0x2c8] sm:$0xff]  }
  0x2f   :  { %1382 = vmatprep.mubr.bf16.mxu1 %v1645_v21  ;;  %v2151_v21 = vld [vmem:[%s2668_s1 + $0x3a8] sm:$0xff]  }
  0x30   :  { %1872 = vmatpush3.bf16.msra.mxu0 %v2079_v54  ;;  %v2131_v54 = vld [vmem:[%s2668_s1 + $0x208] sm:$0xff]  }
  0x31   :  { %1900 = vmatpush3.bf16.msra.mxu1 %v2080_v55  ;;  %1873 = vmatprep.subr.bf16.mxu0 %v2081_v56  ;;  %v2132_v55 = vld [vmem:[%s2668_s1 + $0x288] sm:$0xff]   ;;  %v2133_v56 = vld [vmem:[%s2668_s1 + $0x240] sm:$0xff]  }
  0x32   :  { %1901 = vmatprep.subr.bf16.mxu1 %v2082_v57  ;;  %v2134_v57 = vld [vmem:[%s2668_s1 + $0x2c0] sm:$0xff]  }
  0x34   :  { %1874 = vmatpush3.bf16.msra.mxu0 %v2083_v58  ;;  %v2135_v58 = vld [vmem:[%s2668_s1 + $0x200] sm:$0xff]  }
  0x35   :  { %1902 = vmatpush3.bf16.msra.mxu1 %v2084_v59  ;;  %1875 = vmatprep.subr.bf16.mxu0 %v2088_v1  ;;  %v2136_v59 = vld [vmem:[%s2668_s1 + $0x280] sm:$0xff]   ;;  %v28_v1 = vld [vmem:[%s2669_s0 + $0x68] sm:$0xff] }
  0x36   :  { %1903 = vmatprep.subr.bf16.mxu1 %v2089_v3  ;;  %v1648_v2 = vcombine.low %v20_v62, %v28_v1  ;;  %v1649_v3 = vcombine.high %v20_v62, %v28_v1 }
  0x38   :  { %1876 = vmatpush3.bf16.msra.mxu0 %v2091_v4  ;;  %v2137_v4 = vld [vmem:[%s2668_s1 + $0x378] sm:$0xff]  }
  0x39   :  { %1904 = vmatpush3.bf16.msra.mxu1 %v2092_v5  ;;  %1877 = vmatprep.subr.bf16.mxu0 %v2093_v6  ;;  %v2138_v5 = vld [vmem:[%s2668_s1 + $0x3f8] sm:$0xff]  }
  0x3a   :  { %1905 = vmatprep.subr.bf16.mxu1 %v2094_v7  ;;  %v2139_v6 = vld [vmem:[%s2668_s1 + $0x338] sm:$0xff]  }
  0x3b   :  { %v2140_v7 = vld [vmem:[%s2668_s1 + $0x3b8] sm:$0xff]  }
  0x3c   :  { %1878 = vmatpush3.bf16.msra.mxu0 %v2095_v8  ;;  %v2141_v8 = vld [vmem:[%s2668_s1 + $0x370] sm:$0xff]  }
  0x3d   :  { %1906 = vmatpush3.bf16.msra.mxu1 %v2096_v9  ;;  %1879 = vmatprep.subr.bf16.mxu0 %v2097_v10  ;;  %v2142_v9 = vld [vmem:[%s2668_s1 + $0x3f0] sm:$0xff]  }
  0x3e   :  { %1907 = vmatprep.subr.bf16.mxu1 %v2098_v11  ;;  %v2143_v10 = vld [vmem:[%s2668_s1 + $0x330] sm:$0xff]  }
  0x3f   :  { %v2144_v11 = vld [vmem:[%s2668_s1 + $0x3b0] sm:$0xff]  }
  0x40   :  { %1880 = vmatpush3.bf16.msra.mxu0 %v2099_v12  ;;  %v35_v12 = vld [vmem:[%s2669_s0 + $0xa0] sm:$0x11] }
  0x41   :  { %1908 = vmatpush3.bf16.msra.mxu1 %v2100_v13  ;;  %1921 = vmatprep.subr.bf16.mxu0 %v2101_v22  ;;  %v1663_v13 = vcombine.high %v35_v12, %v35_v12  ;;  %v1662_v14 = vcombine.low %v35_v12, %v35_v12  ;;  %v2153_v22 = vld [vmem:[%s2668_s1 + $0x360] sm:$0xff]  }
  0x42   :  { %1949 = vmatprep.subr.bf16.mxu1 %v2102_v23  ;;  %v2154_v23 = vld [vmem:[%s2668_s1 + $0x3e0] sm:$0xff]  }
  0x43   :  { %1335 = vmatmul.mubr.bf16.vlgmr.msra.gmra.mxu0 %v1642_v17  ;;  %v36_v17 = vld [vmem:[%s2669_s0 + $0xa8] sm:$0x11] }
  0x44   :  { %1383 = vmatmul.mubr.bf16.vlgmr.msra.gmra.mxu1 %v1644_v20  ;;  %1922 = vmatpush3.bf16.msra.mxu0 %v2103_v24  ;;  %v1665_v18 = vcombine.high %v36_v17, %v36_v17  ;;  %v1664_v20 = vcombine.low %v36_v17, %v36_v17  ;;  %v2155_v24 = vld [vmem:[%s2668_s1 + $0x320] sm:$0xff]  }
  0x45   :  { %1950 = vmatpush3.bf16.msra.mxu1 %v2104_v25  ;;  %1923 = vmatprep.subr.bf16.mxu0 %v2105_v26  ;;  %v2156_v25 = vld [vmem:[%s2668_s1 + $0x3a0] sm:$0xff]   ;;  %v2157_v26 = vld [vmem:[%s2668_s1 + $0x358] sm:$0xff]  }
  0x46   :  { %1951 = vmatprep.subr.bf16.mxu1 %v2106_v27  ;;  %1342 = vmatprep.mubr.bf16.mxu0 %v1659_v31  ;;  %v2158_v27 = vld [vmem:[%s2668_s1 + $0x3d8] sm:$0xff]   ;;  %v2162_v31 = vld [vmem:[%s2668_s1 + $0x3d0] sm:$0xff]  }
  0x47   :  { %1390 = vmatprep.mubr.bf16.mxu1 %v1661_v36  ;;  %v2167_v36 = vld [vmem:[%s2668_s1 + $0x308] sm:$0xff]  }
  0x48   :  { %1924 = vmatpush3.bf16.msra.mxu0 %v2107_v28  ;;  %v2159_v28 = vld [vmem:[%s2668_s1 + $0x318] sm:$0xff]  }
  0x49   :  { %1952 = vmatpush3.bf16.msra.mxu1 %v2108_v29  ;;  %1925 = vmatprep.subr.bf16.mxu0 %v2111_v33  ;;  %v2160_v29 = vld [vmem:[%s2668_s1 + $0x398] sm:$0xff]   ;;  %v2164_v33 = vld [vmem:[%s2668_s1 + $0x390] sm:$0xff]  }
  0x4a   :  { %1953 = vmatprep.subr.bf16.mxu1 %v2112_v34  ;;  %v2165_v34 = vld [vmem:[%s2668_s1 + $0x348] sm:$0xff]  }
  0x4b   :  { %1343 = vmatmul.mubr.bf16.gmra.mxu0 %v1658_v32  ;;  %v2163_v32 = vld [vmem:[%s2668_s1 + $0x310] sm:$0xff]  }
  0x4c   :  { %1926 = vmatpush3.bf16.msra.mxu0 %v2114_v37  ;;  %1391 = vmatmul.mubr.bf16.gmra.mxu1 %v1660_v38  ;;  %v2168_v37 = vld [vmem:[%s2668_s1 + $0x388] sm:$0xff]   ;;  %v2169_v38 = vld [vmem:[%s2668_s1 + $0x340] sm:$0xff]  }
  0x4d   :  { %1954 = vmatpush3.bf16.msra.mxu1 %v2115_v39  ;;  %1927 = vmatprep.subr.bf16.mxu0 %v2117_v40  ;;  %v2170_v39 = vld [vmem:[%s2668_s1 + $0x3c0] sm:$0xff]  }
  0x4e   :  { %1955 = vmatprep.subr.bf16.mxu1 %v2118_v41  ;;  %1430 = vmatprep.mubr.bf16.mxu0 %v1647_v0  ;;  %v2171_v40 = vld [vmem:[%s2668_s1 + $0x300] sm:$0xff]  }
  0x4f   :  { %1478 = vmatprep.mubr.bf16.mxu1 %v1649_v3  ;;  %v2172_v41 = vld [vmem:[%s2668_s1 + $0x380] sm:$0xff]  }
  0x50   :  { %1928 = vmatpush3.bf16.msra.mxu0 %v2119_v42  ;;  %v21_v42 = vld [vmem:[%s2669_s0 + $0x30] sm:$0xff] }
  0x51   :  { %1956 = vmatpush3.bf16.msra.mxu1 %v2120_v43  ;;  %1929 = vmatprep.subr.bf16.mxu0 %v2121_v44  ;;  %v29_v43 = vld [vmem:[%s2669_s0 + $0x70] sm:$0xff]  ;;  %v22_v44 = vld [vmem:[%s2669_s0 + $0x38] sm:$0xff] }
  0x52   :  { %1957 = vmatprep.subr.bf16.mxu1 %v2122_v45  ;;  %v1650_v45 = vcombine.low %v21_v42, %v29_v43 }
  0x54   :  { %1930 = vmatpush3.bf16.msra.mxu0 %v2123_v46  ;;  %v1651_v46 = vcombine.high %v21_v42, %v29_v43 }
  0x55   :  { %1958 = vmatpush3.bf16.msra.mxu1 %v2124_v47  ;;  %1931 = vmatprep.subr.bf16.mxu0 %v2125_v48  ;;  %v30_v47 = vld [vmem:[%s2669_s0 + $0x78] sm:$0xff]  ;;  %v37_v48 = vld [vmem:[%s2669_s0 + $0xb0] sm:$0x11] }
  0x56   :  { %1959 = vmatprep.subr.bf16.mxu1 %v2126_v49  ;;  %v38_v49 = vld [vmem:[%s2669_s0 + $0xb8] sm:$0x11] }
  0x58   :  { %1932 = vmatpush3.bf16.msra.mxu0 %v2127_v50  ;;  %v1652_v50 = vcombine.low %v22_v44, %v30_v47 }
  0x59   :  { %1960 = vmatpush3.bf16.msra.mxu1 %v2128_v51  ;;  %1933 = vmatprep.subr.bf16.mxu0 %v2129_v52  ;;  %v1653_v51 = vcombine.high %v22_v44, %v30_v47  ;;  %v1667_v52 = vcombine.high %v37_v48, %v37_v48 }
  0x5a   :  { %1961 = vmatprep.subr.bf16.mxu1 %v2130_v53  ;;  %v1669_v53 = vcombine.high %v38_v49, %v38_v49 }
  0x5c   :  { %1934 = vmatpush3.bf16.msra.mxu0 %v2131_v54  ;;  %v1666_v54 = vcombine.low %v37_v48, %v37_v48 }
  0x5d   :  { %1962 = vmatpush3.bf16.msra.mxu1 %v2132_v55  ;;  %1935 = vmatprep.subr.bf16.mxu0 %v2133_v56  ;;  %v1668_v55 = vcombine.low %v38_v49, %v38_v49 }
  0x5e   :  { %1963 = vmatprep.subr.bf16.mxu1 %v2134_v57 }
  0x60   :  { %1936 = vmatpush3.bf16.msra.mxu0 %v2135_v58  ;;  %v1637_v58 = vld [vmem:[%s2670_s2] ss:$0 sm:$0xff] }
  0x61   :  { %1964 = vmatpush3.bf16.msra.mxu1 %v2136_v59  ;;  %1977 = vmatprep.subr.bf16.mxu0 %v2137_v4 }
  0x62   :  { %2005 = vmatprep.subr.bf16.mxu1 %v2138_v5 }
  0x63   :  { %1431 = vmatmul.mubr.bf16.vlgmr.msra.gmra.mxu0 %v1646_v63 }
  0x64   :  { %1479 = vmatmul.mubr.bf16.vlgmr.msra.gmra.mxu1 %v1648_v2  ;;  %1978 = vmatpush3.bf16.msra.mxu0 %v2139_v6 }
  0x65   :  { %2006 = vmatpush3.bf16.msra.mxu1 %v2140_v7  ;;  %1979 = vmatprep.subr.bf16.mxu0 %v2141_v8 }
  0x66   :  { %2007 = vmatprep.subr.bf16.mxu1 %v2142_v9  ;;  %1438 = vmatprep.mubr.bf16.mxu0 %v1663_v13 }
  0x67   :  { %1486 = vmatprep.mubr.bf16.mxu1 %v1665_v18 }
  0x68   :  { %1980 = vmatpush3.bf16.msra.mxu0 %v2143_v10 }
  0x69   :  { %2008 = vmatpush3.bf16.msra.mxu1 %v2144_v11  ;;  %1981 = vmatprep.subr.bf16.mxu0 %v2147_v15 }
  0x6a   :  { %2009 = vmatprep.subr.bf16.mxu1 %v2148_v16 }
  0x6b   :  { %1439 = vmatmul.mubr.bf16.gmra.mxu0 %v1662_v14 }
  0x6c   :  { %1982 = vmatpush3.bf16.msra.mxu0 %v2150_v19  ;;  %1487 = vmatmul.mubr.bf16.gmra.mxu1 %v1664_v20 }
  0x6d   :  { %2010 = vmatpush3.bf16.msra.mxu1 %v2151_v21  ;;  %1983 = vmatprep.subr.bf16.mxu0 %v2153_v22 }
  0x6e   :  { %2011 = vmatprep.subr.bf16.mxu1 %v2154_v23  ;;  %1526 = vmatprep.mubr.bf16.mxu0 %v1651_v46 }
  0x6f   :  { %1574 = vmatprep.mubr.bf16.mxu1 %v1653_v51 }
  0x70   :  { %1984 = vmatpush3.bf16.msra.mxu0 %v2155_v24 }
  0x71   :  { %2012 = vmatpush3.bf16.msra.mxu1 %v2156_v25  ;;  %1985 = vmatprep.subr.bf16.mxu0 %v2157_v26 }
  0x72   :  { %2013 = vmatprep.subr.bf16.mxu1 %v2158_v27 }
  0x74   :  { %1986 = vmatpush3.bf16.msra.mxu0 %v2159_v28 }
  0x75   :  { %2014 = vmatpush3.bf16.msra.mxu1 %v2160_v29  ;;  %1987 = vmatprep.subr.bf16.mxu0 %v2161_v30 }
  0x76   :  { %2015 = vmatprep.subr.bf16.mxu1 %v2162_v31 }
  0x78   :  { %1988 = vmatpush3.bf16.msra.mxu0 %v2163_v32 }
  0x79   :  { %2016 = vmatpush3.bf16.msra.mxu1 %v2164_v33  ;;  %1989 = vmatprep.subr.bf16.mxu0 %v2165_v34 }
  0x7a   :  { %2017 = vmatprep.subr.bf16.mxu1 %v2166_v35 }
  0x7c   :  { %1990 = vmatpush3.bf16.msra.mxu0 %v2167_v36 }
  0x7d   :  { %2018 = vmatpush3.bf16.msra.mxu1 %v2168_v37  ;;  %1991 = vmatprep.subr.bf16.mxu0 %v2169_v38 }
  0x7e   :  { %2019 = vmatprep.subr.bf16.mxu1 %v2170_v39 }
  0x80   :  { %1992 = vmatpush3.bf16.msra.mxu0 %v2171_v40 }
  0x81   :  { %2020 = vmatpush3.bf16.msra.mxu1 %v2172_v41 }
  0x83   :  { %1527 = vmatmul.mubr.bf16.vlgmr.msra.gmra.mxu0 %v1650_v45 }
  0x84   :  { %1575 = vmatmul.mubr.bf16.vlgmr.msra.gmra.mxu1 %v1652_v50  ;;  %1534 = vmatprep.mubr.bf16.mxu0 %v1667_v52 }
  0x85   :  { %1582 = vmatprep.mubr.bf16.mxu1 %v1669_v53 }
  0x8b   :  { %1535 = vmatmul.mubr.bf16.gmra.mxu0 %v1666_v54 }
  0x8c   :  { %1583 = vmatmul.mubr.bf16.gmra.mxu1 %v1668_v55 }
  0xe3   :  { %v1825_v56 = vpop.f32.mrf.mxu0 }
  0xe4   :  { %v1853_v57 = vpop.f32.mrf.mxu1 }
  0xe5   :  { %v1826_v59 = vpop.f32.mrf.mxu0 }
  0xe6   :  { %v1827_v60 = vadd.f32 %v1826_v59, %v1825_v56  ;;  %v1854_v61 = vpop.f32.mrf.mxu1 }
  0xe7   :  { %v1855_v62 = vadd.f32 %v1854_v61, %v1853_v57  ;;  %v1828_v63 = vpop.f32.mrf.mxu0 }
  0xe8   :  { %v1241_v0 = vadd.f32 %v1827_v60, %v1637_v58  ;;  %v1856_v1 = vpop.f32.mrf.mxu1 }
  0xe9   :  { %v1829_v2 = vpop.f32.mrf.mxu0 }
  0xea   :  { %v1289_v3 = vadd.f32 %v1855_v62, %v1241_v0  ;;  %v1830_v4 = vadd.f32 %v1829_v2, %v1828_v63  ;;  %v1857_v5 = vpop.f32.mrf.mxu1 }
  0xeb   :  { %v1858_v6 = vadd.f32 %v1857_v5, %v1856_v1  ;;  %v1831_v9 = vpop.f32.mrf.mxu0 }
  0xec   :  { %v1244_v7 = vadd.f32 %v1830_v4, %v1637_v58  ;;  %v1859_v10 = vpop.f32.mrf.mxu1 }
  0xed   :  { %v1832_v11 = vpop.f32.mrf.mxu0 }
  0xee   :  { %v1292_v8 = vadd.f32 %v1858_v6, %v1244_v7  ;;  %v1833_v12 = vadd.f32 %v1832_v11, %v1831_v9  ;;  %v1860_v13 = vpop.f32.mrf.mxu1 }
  0xef   :  { %v1834_v14 = vpop.f32.mrf.mxu0  ;;  %v1861_v15 = vadd.f32 %v1860_v13, %v1859_v10 }
  0xf0   :  { %v1249_v16 = vadd.f32 %v1833_v12, %v1637_v58  ;;  %v1862_v17 = vpop.f32.mrf.mxu1 }
  0xf1   :  { %v1835_v18 = vpop.f32.mrf.mxu0 }
  0xf2   :  { %v1297_v19 = vadd.f32 %v1861_v15, %v1249_v16  ;;  %v1863_v20 = vpop.f32.mrf.mxu1 }
 0x103   :  { %v1881_v21 = vpop.f32.mrf.mxu0 }
 0x104   :  { %v1909_v22 = vpop.f32.mrf.mxu1 }
 0x105   :  { %v1882_v23 = vpop.f32.mrf.mxu0 }
 0x106   :  { %v1883_v24 = vadd.f32 %v1882_v23, %v1881_v21  ;;  %v1910_v25 = vpop.f32.mrf.mxu1 }
 0x107   :  { %v1911_v26 = vadd.f32 %v1910_v25, %v1909_v22  ;;  %v1884_v27 = vpop.f32.mrf.mxu0 }
 0x108   :  { %v1337_v28 = vadd.f32 %v1883_v24, %v1289_v3  ;;  %v1912_v29 = vpop.f32.mrf.mxu1 }
 0x109   :  { %v1885_v30 = vpop.f32.mrf.mxu0 }
 0x10a   :  { %v1385_v31 = vadd.f32 %v1911_v26, %v1337_v28  ;;  %v1913_v33 = vpop.f32.mrf.mxu1  ;;  %v1886_v57 = vadd.f32 %v1885_v30, %v1884_v27 }
 0x10b   :  { %v1887_v32 = vpop.f32.mrf.mxu0  ;;  %v1914_v61 = vadd.f32 %v1913_v33, %v1912_v29 }
 0x10c   :  { %v1915_v35 = vpop.f32.mrf.mxu1  ;;  %v1340_v59 = vadd.f32 %v1886_v57, %v1292_v8 }
 0x10d   :  { %v1888_v34 = vpop.f32.mrf.mxu0 }
 0x10e   :  { %v1916_v37 = vpop.f32.mrf.mxu1  ;;  %v1889_v60 = vadd.f32 %v1888_v34, %v1887_v32  ;;  %v1388_v1 = vadd.f32 %v1914_v61, %v1340_v59 }
 0x10f   :  { %v1890_v36 = vpop.f32.mrf.mxu0  ;;  %v1917_v4 = vadd.f32 %v1916_v37, %v1915_v35 }
 0x110   :  { %v1918_v39 = vpop.f32.mrf.mxu1  ;;  %v1345_v3 = vadd.f32 %v1889_v60, %v1297_v19 }
 0x111   :  { %v1891_v38 = vpop.f32.mrf.mxu0 }
 0x112   :  { %v1919_v40 = vpop.f32.mrf.mxu1  ;;  %v1393_v15 = vadd.f32 %v1917_v4, %v1345_v3 }
 0x123   :  { %v1937_v41 = vpop.f32.mrf.mxu0 }
 0x124   :  { %v1965_v42 = vpop.f32.mrf.mxu1 }
 0x125   :  { %v1938_v43 = vpop.f32.mrf.mxu0 }
 0x126   :  { %v1966_v44 = vpop.f32.mrf.mxu1  ;;  %v1939_v58 = vadd.f32 %v1938_v43, %v1937_v41 }
 0x127   :  { %v1940_v45 = vpop.f32.mrf.mxu0  ;;  %v1967_v0 = vadd.f32 %v1966_v44, %v1965_v42 }
 0x128   :  { %v1968_v46 = vpop.f32.mrf.mxu1  ;;  %v1433_v63 = vadd.f32 %v1939_v58, %v1385_v31 }
 0x129   :  { %v1941_v47 = vpop.f32.mrf.mxu0 }
 0x12a   :  { %v1969_v49 = vpop.f32.mrf.mxu1  ;;  %v1942_v62 = vadd.f32 %v1941_v47, %v1940_v45  ;;  %v1481_v9 = vadd.f32 %v1967_v0, %v1433_v63 }
 0x12b   :  { %v1943_v48 = vpop.f32.mrf.mxu0  ;;  %v1970_v13 = vadd.f32 %v1969_v49, %v1968_v46 }
 0x12c   :  { %v1971_v51 = vpop.f32.mrf.mxu1  ;;  %v1436_v6 = vadd.f32 %v1942_v62, %v1388_v1 }
 0x12d   :  { %v1944_v50 = vpop.f32.mrf.mxu0 }
 0x12e   :  { %v1972_v53 = vpop.f32.mrf.mxu1  ;;  %v1945_v10 = vadd.f32 %v1944_v50, %v1943_v48  ;;  %v1484_v18 = vadd.f32 %v1970_v13, %v1436_v6 }
 0x12f   :  { %v1946_v52 = vpop.f32.mrf.mxu0  ;;  %v1973_v22 = vadd.f32 %v1972_v53, %v1971_v51 }
 0x130   :  { %v1974_v55 = vpop.f32.mrf.mxu1  ;;  %v1441_v21 = vadd.f32 %v1945_v10, %v1393_v15 }
 0x131   :  { %v1947_v54 = vpop.f32.mrf.mxu0 }
 0x132   :  { %v1975_v56 = vpop.f32.mrf.mxu1  ;;  %v1489_v31 = vadd.f32 %v1973_v22, %v1441_v21 }
 0x143   :  { %v1993_v2 = vpop.f32.mrf.mxu0 }
 0x144   :  { %v2021_v5 = vpop.f32.mrf.mxu1 }
 0x145   :  { %v1994_v7 = vpop.f32.mrf.mxu0 }
 0x146   :  { %v1995_v11 = vadd.f32 %v1994_v7, %v1993_v2  ;;  %v2022_v12 = vpop.f32.mrf.mxu1 }
 0x147   :  { %v1996_v14 = vpop.f32.mrf.mxu0  ;;  %v2023_v16 = vadd.f32 %v2022_v12, %v2021_v5 }
 0x148   :  { %v1529_v8 = vadd.f32 %v1995_v11, %v1481_v9  ;;  %v2024_v17 = vpop.f32.mrf.mxu1 }
 0x149   :  { %v1997_v20 = vpop.f32.mrf.mxu0 }
 0x14a   :  { %v1577_v23 = vadd.f32 %v2023_v16, %v1529_v8  ;;  %v1998_v19 = vadd.f32 %v1997_v20, %v1996_v14  ;;  %v2025_v24 = vpop.f32.mrf.mxu1 }
 0x14b   :  { %v1999_v25 = vpop.f32.mrf.mxu0  ;;  %v2026_v28 = vadd.f32 %v2025_v24, %v2024_v17 }
 0x14c   :  { %v1593_v26 = vmul.f32 %v1577_v23, %v1577_v23  ;;  %v1532_v27 = vadd.f32 %v1998_v19, %v1484_v18  ;;  %v2027_v29 = vpop.f32.mrf.mxu1  ;;  %v1590_v59 = vmul.f32 0.5, %v1577_v23 }
 0x14d   :  { %v2000_v30 = vpop.f32.mrf.mxu0 }
 0x14e   :  { %v1596_v32 = vmul.f32 %v1593_v26, %v1577_v23  ;;  %v1580_v33 = vadd.f32 %v2026_v28, %v1532_v27  ;;  %v2001_v34 = vadd.f32 %v2000_v30, %v1999_v25  ;;  %v2028_v35 = vpop.f32.mrf.mxu1 }
 0x14f   :  { %v2002_v36 = vpop.f32.mrf.mxu0  ;;  %v2029_v40 = vadd.f32 %v2028_v35, %v2027_v29 }
 0x150   :  { %v1599_v37 = vmul.f32 0.044715, %v1596_v32  ;;  %v1594_v38 = vmul.f32 %v1580_v33, %v1580_v33  ;;  %v1537_v39 = vadd.f32 %v2001_v34, %v1489_v31  ;;  %v2030_v41 = vpop.f32.mrf.mxu1  ;;  %v1591_v60 = vmul.f32 0.5, %v1580_v33 }
 0x151   :  { %v2003_v42 = vpop.f32.mrf.mxu0 }
 0x152   :  { %v1602_v43 = vadd.f32 %v1599_v37, %v1577_v23  ;;  %v1597_v44 = vmul.f32 %v1594_v38, %v1580_v33  ;;  %v1585_v45 = vadd.f32 %v2029_v40, %v1537_v39  ;;  %v2031_v46 = vpop.f32.mrf.mxu1 }
 0x154   :  { %v1605_v47 = vmul.f32 0.7978846, %v1602_v43  ;;  %v1600_v48 = vmul.f32 0.044715, %v1597_v44  ;;  %v1595_v49 = vmul.f32 %v1585_v45, %v1585_v45  ;;  %v1592_v2 = vmul.f32 0.5, %v1585_v45 }
 0x156   :  { %2177 = vtanh.f32 %v1605_v47  ;;  %v1603_v50 = vadd.f32 %v1600_v48, %v1580_v33  ;;  %v1598_v51 = vmul.f32 %v1595_v49, %v1585_v45 }
 0x158   :  { %v1606_v52 = vmul.f32 0.7978846, %v1603_v50  ;;  %v1601_v53 = vmul.f32 0.044715, %v1598_v51 }
 0x15a   :  { %2179 = vtanh.f32 %v1606_v52  ;;  %v1604_v54 = vadd.f32 %v1601_v53, %v1585_v45 }
 0x15c   :  { %v1607_v55 = vmul.f32 0.7978846, %v1604_v54 }
 0x15e   :  { %2181 = vtanh.f32 %v1607_v55 }
 0x163   :  { %v2178_v56 = vpop.eup %2177 }
 0x164   :  { %v1611_v57 = vadd.f32 1.0, %v2178_v56 }
 0x166   :  { %v1614_v62 = vmul.f32 %v1611_v57, %v1590_v59 }
 0x167   :  { %v2180_v58 = vpop.eup %2179 }
 0x168   :  { %v1612_v61 = vadd.f32 1.0, %v2180_v58 }
 0x16a   :  { %v1615_v63 = vmul.f32 %v1612_v61, %v1591_v60 }
 0x16b   :  { %v2182_v0 = vpop.eup %2181 }
 0x16c   :  { %v1807_v1 = vpack.c.bf16 %v1615_v63, %v1614_v62  ;;  %v1613_v3 = vadd.f32 1.0, %v2182_v0 }
 0x16e   :  { %v1616_v4 = vmul.f32 %v1613_v3, %v1592_v2  ;;  %1808 = vst [vmem:[%s2671_s3] sm:$0xff] %v1807_v1  }
 0x170   :  { %v1803_v5 = vpack.c.bf16 %v1616_v4, %v1616_v4 }
 0x172   :  { %1632 = vst [vmem:[%s2671_s3 + $0x8] sm:$0x1] %v1803_v5 }

// kernel: manager_forward.5
= control target key start
LH: loop header
LB: loop body
LE: loop exit
PB: predicated region body
PF: predicated region fallthrough
CT: control target
= control target key end

     0   :  { %v2521_v21 = vmov 1966171168   ;;  %v186_v23 = vlaneseq  ;;  %vm2523_vm0 = vmmov 0   ;;  %vm1130_vm1 = vcmask 523264   ;;  %s3147_s1 = inlined_call_operand.vmem [shape: bf16[1152,64], index: 1, kind: input, shape index: {}]   ;;  %s3148_s0 = inlined_call_operand.vmem [shape: bf16[2,1152], index: 0, kind: input, shape index: {}]   ;;  %s3149_s3 = inlined_call_operand.vmem [shape: bf16[64,1024], index: 3, kind: input, shape index: {}]   ;;  %s3150_s5 = inlined_call_operand.vmem [shape: bf16[1024,128], index: 5, kind: input, shape index: {}]   ;;  %s3151_s2 = inlined_call_operand.vmem [shape: f32[1,64], index: 2, kind: input, shape index: {}]   ;;  %s3152_s4 = inlined_call_operand.vmem [shape: f32[1,1024], index: 4, kind: input, shape index: {}]   ;;  %s3153_s6 = inlined_call_operand.vmem [shape: f32[1,128], index: 6, kind: input, shape index: {}]   ;;  %s3154_s7 = inlined_call_operand.vmem [shape: f32[2,128], index: 7, kind: output, shape index: {}]  }
   0x1   :  { %v2382_v0 = vld [vmem:[%s3147_s1 + $0x78] sm:$0xff]   ;;  %v2386_v4 = vld [vmem:[%s3147_s1 + $0x70] sm:$0xff]   ;;  %v2390_v8 = vld [vmem:[%s3147_s1 + $0x68] sm:$0xff]   ;;  %v184_v22 = vunpack.c.l.s4 %v2521_v21 }
   0x2   :  { %v2383_v1 = vld [vmem:[%s3147_s1 + $0x38] sm:$0xff]   ;;  %2173 = vmatprep.subr.bf16.mxu0 %v2382_v0  ;;  %v2387_v5 = vld [vmem:[%s3147_s1 + $0x30] sm:$0xff]   ;;  %v2391_v9 = vld [vmem:[%s3147_s1 + $0x28] sm:$0xff]   ;;  %v2640_v29 = vshrl.u32 %v186_v23, 7 }
   0x3   :  { %v2384_v2 = vld [vmem:[%s3147_s1 + $0xf8] sm:$0xff]   ;;  %2174 = vmatpush3.bf16.msra.mxu0 %v2383_v1  ;;  %v2388_v6 = vld [vmem:[%s3147_s1 + $0xf0] sm:$0xff]   ;;  %v2392_v10 = vld [vmem:[%s3147_s1 + $0xe8] sm:$0xff]   ;;  %v185_v28 = vunpack.c.0.s8 %v184_v22 }
   0x4   :  { %v2385_v3 = vld [vmem:[%s3147_s1 + $0xb8] sm:$0xff]   ;;  %2195 = vmatprep.subr.bf16.mxu1 %v2384_v2  ;;  %2175 = vmatprep.subr.bf16.mxu0 %v2386_v4  ;;  %v2389_v7 = vld [vmem:[%s3147_s1 + $0xb0] sm:$0xff]   ;;  %v2393_v11 = vld [vmem:[%s3147_s1 + $0xa8] sm:$0xff]  }
   0x5   :  { %2196 = vmatpush3.bf16.msra.mxu1 %v2385_v3  ;;  %v2394_v12 = vld [vmem:[%s3147_s1 + $0x60] sm:$0xff]   ;;  %v2398_v16 = vld [vmem:[%s3147_s1 + $0x58] sm:$0xff]   ;;  %v2402_v20 = vld [vmem:[%s3147_s1 + $0x50] sm:$0xff]   ;;  %v2655_v34 = vsub.s32 %v185_v28, %v2640_v29 }
   0x6   :  { %2197 = vmatprep.subr.bf16.mxu1 %v2388_v6  ;;  %v2395_v13 = vld [vmem:[%s3147_s1 + $0x20] sm:$0xff]   ;;  %v2399_v17 = vld [vmem:[%s3147_s1 + $0x18] sm:$0xff]   ;;  %v2403_v24 = vld [vmem:[%s3147_s1 + $0x10] sm:$0xff]  }
   0x7   :  { %2176 = vmatpush3.bf16.msra.mxu0 %v2387_v5  ;;  %v2396_v14 = vld [vmem:[%s3147_s1 + $0xe0] sm:$0xff]   ;;  %v2400_v18 = vld [vmem:[%s3147_s1 + $0xd8] sm:$0xff]   ;;  %v2404_v25 = vld [vmem:[%s3147_s1 + $0xd0] sm:$0xff]  }
   0x8   :  { %2177 = vmatprep.subr.bf16.mxu0 %v2390_v8  ;;  %v2397_v15 = vld [vmem:[%s3147_s1 + $0xa0] sm:$0xff]   ;;  %v2401_v19 = vld [vmem:[%s3147_s1 + $0x98] sm:$0xff]   ;;  %v2405_v26 = vld [vmem:[%s3147_s1 + $0x90] sm:$0xff]  }
   0x9   :  { %2198 = vmatpush3.bf16.msra.mxu1 %v2389_v7  ;;  %v2406_v27 = vld [vmem:[%s3147_s1 + $0x48] sm:$0xff]   ;;  %v2410_v33 = vld [vmem:[%s3147_s1 + $0x40] sm:$0xff]   ;;  %v2415_v41 = vld [vmem:[%s3147_s1 + $0x178] sm:$0xff]  }
   0xa   :  { %2199 = vmatprep.subr.bf16.mxu1 %v2392_v10  ;;  %v2407_v30 = vld [vmem:[%s3147_s1 + $0x8] sm:$0xff]   ;;  %v2411_v35 = vld [vmem:[%s3147_s1] sm:$0xff]   ;;  %v2417_v45 = vld [vmem:[%s3147_s1 + $0x1f8] sm:$0xff]  }
   0xb   :  { %2178 = vmatpush3.bf16.msra.mxu0 %v2391_v9  ;;  %v2408_v31 = vld [vmem:[%s3147_s1 + $0xc8] sm:$0xff]   ;;  %v2412_v36 = vld [vmem:[%s3147_s1 + $0xc0] sm:$0xff]   ;;  %v2416_v47 = vld [vmem:[%s3147_s1 + $0x138] sm:$0xff]  }
   0xc   :  { %2179 = vmatprep.subr.bf16.mxu0 %v2394_v12  ;;  %v2409_v32 = vld [vmem:[%s3147_s1 + $0x88] sm:$0xff]   ;;  %v27_v37 = vld [vmem:[%s3148_s0] sm:$0xff]  ;;  %v2419_v50 = vld [vmem:[%s3147_s1 + $0x170] sm:$0xff]  }
   0xd   :  { %2200 = vmatpush3.bf16.msra.mxu1 %v2393_v11  ;;  %v182_v38 = vcombine.high %v27_v37, %v27_v37  ;;  %v189_v39 = vrot.slane %v27_v37, %v2655_v34  ;;  %v2414_v40 = vld [vmem:[%s3147_s1 + $0x80] sm:$0xff]   ;;  %v2418_v52 = vld [vmem:[%s3147_s1 + $0x1b8] sm:$0xff]   ;;  %v2421_v54 = vld [vmem:[%s3147_s1 + $0x1f0] sm:$0xff]  }
   0xe   :  { %2201 = vmatprep.subr.bf16.mxu1 %v2396_v14  ;;  %v2420_v55 = vld [vmem:[%s3147_s1 + $0x130] sm:$0xff]   ;;  %v2423_v57 = vld [vmem:[%s3147_s1 + $0x168] sm:$0xff]   ;;  %v2427_v61 = vld [vmem:[%s3147_s1 + $0x160] sm:$0xff]  }
   0xf   :  { %2180 = vmatpush3.bf16.msra.mxu0 %v2395_v13  ;;  %v197_v42 = vcombine.high %v189_v39, %v189_v39  ;;  %v205_v43 = vrot.slane %v189_v39, %v2655_v34  ;;  %v2675_v44 = vrot.slane %v182_v38, %v2655_v34  ;;  %v2422_v58 = vld [vmem:[%s3147_s1 + $0x1b0] sm:$0xff]   ;;  %v2425_v59 = vld [vmem:[%s3147_s1 + $0x1e8] sm:$0xff]   ;;  %v2429_v63 = vld [vmem:[%s3147_s1 + $0x1e0] sm:$0xff]  }
  0x10   :  { %2181 = vmatprep.subr.bf16.mxu0 %v2398_v16  ;;  %v2424_v60 = vld [vmem:[%s3147_s1 + $0x128] sm:$0xff]   ;;  %v2428_v0 = vld [vmem:[%s3147_s1 + $0x120] sm:$0xff]   ;;  %v2431_v1 = vld [vmem:[%s3147_s1 + $0x158] sm:$0xff]  }
  0x11   :  { %2202 = vmatpush3.bf16.msra.mxu1 %v2397_v15  ;;  %v219_v46 = vrot.slane %v197_v42, %v2655_v34  ;;  %v198_v48 = vcombine.high %v2675_v44, %v2675_v44  ;;  %v227_v49 = vcombine.high %v205_v43, %v205_v43  ;;  %v2426_v62 = vld [vmem:[%s3147_s1 + $0x1a8] sm:$0xff]   ;;  %v2430_v2 = vld [vmem:[%s3147_s1 + $0x1a0] sm:$0xff]   ;;  %v2433_v3 = vld [vmem:[%s3147_s1 + $0x1d8] sm:$0xff]  }
  0x12   :  { %2203 = vmatprep.subr.bf16.mxu1 %v2400_v18  ;;  %v2432_v4 = vld [vmem:[%s3147_s1 + $0x118] sm:$0xff]   ;;  %v2435_v5 = vld [vmem:[%s3147_s1 + $0x150] sm:$0xff]   ;;  %v2439_v9 = vld [vmem:[%s3147_s1 + $0x148] sm:$0xff]  }
  0x13   :  { %2182 = vmatpush3.bf16.msra.mxu0 %v2399_v17  ;;  %718 = vmatprep.mubr.bf16.mxu0 %v219_v46  ;;  %v229_v51 = vcombine.high %v219_v46, %v219_v46  ;;  %v226_v53 = vrot.slane %v198_v48, %v2655_v34  ;;  %v2434_v6 = vld [vmem:[%s3147_s1 + $0x198] sm:$0xff]   ;;  %v2437_v7 = vld [vmem:[%s3147_s1 + $0x1d0] sm:$0xff]   ;;  %v2441_v11 = vld [vmem:[%s3147_s1 + $0x1c8] sm:$0xff]   ;;  %v212_v17 = vrot.slane %v2675_v44, %v2655_v34 }
  0x14   :  { %2183 = vmatprep.subr.bf16.mxu0 %v2402_v20  ;;  %v2436_v8 = vld [vmem:[%s3147_s1 + $0x110] sm:$0xff]   ;;  %v2440_v12 = vld [vmem:[%s3147_s1 + $0x108] sm:$0xff]   ;;  %v2443_v13 = vld [vmem:[%s3147_s1 + $0x140] sm:$0xff]   ;;  %v2522_v20 = vmov 0.0  }
  0x15   :  { %2204 = vmatpush3.bf16.msra.mxu1 %v2401_v19  ;;  %758 = vmatprep.mubr.bf16.mxu1 %v229_v51  ;;  %v230_v56 = vcombine.high %v226_v53, %v226_v53  ;;  %v2438_v10 = vld [vmem:[%s3147_s1 + $0x190] sm:$0xff]   ;;  %v2442_v14 = vld [vmem:[%s3147_s1 + $0x188] sm:$0xff]   ;;  %v2445_v15 = vld [vmem:[%s3147_s1 + $0x1c0] sm:$0xff]   ;;  %v228_v21 = vcombine.high %v212_v17, %v212_v17 }
  0x16   :  { %2205 = vmatprep.subr.bf16.mxu1 %v2404_v25  ;;  %v2444_v16 = vld [vmem:[%s3147_s1 + $0x100] sm:$0xff]   ;;  %v2447_v19 = vld [vmem:[%s3147_s1 + $0x238] sm:$0xff]   ;;  %v2448_v22 = vld [vmem:[%s3147_s1 + $0x230] sm:$0xff]  }
  0x17   :  { %2184 = vmatpush3.bf16.msra.mxu0 %v2403_v24  ;;  %v2446_v18 = vld [vmem:[%s3147_s1 + $0x180] sm:$0xff]   ;;  %v1999_v23 = vld.sshfl [vmem:[%s3148_s0 + $0x8] sm:$0x1 pattern:$0x75316420]  ;;  %v2452_v28 = vld [vmem:[%s3147_s1 + $0x210] sm:$0xff]  }
  0x18   :  { %2185 = vmatprep.subr.bf16.mxu0 %v2406_v27  ;;  %v244_v24 = vrot.slane %v1999_v23, %v2655_v34  ;;  %v2449_v25 = vld [vmem:[%s3147_s1 + $0x228] sm:$0xff]   ;;  %v2451_v27 = vld [vmem:[%s3147_s1 + $0x218] sm:$0xff]   ;;  %v918_v44 = vld [vmem:[%s3149_s3 + $0xb0] sm:$0xff] }
  0x19   :  { %2206 = vmatpush3.bf16.msra.mxu1 %v2405_v26  ;;  %v2450_v26 = vld [vmem:[%s3147_s1 + $0x220] sm:$0xff]   ;;  %v906_v51 = vld [vmem:[%s3149_s3 + $0x50] sm:$0xff] }
  0x1a   :  { %2207 = vmatprep.subr.bf16.mxu1 %v2408_v31  ;;  %v2454_v31 = vld [vmem:[%s3147_s1 + $0x200] sm:$0xff]  }
  0x1b   :  { %2186 = vmatpush3.bf16.msra.mxu0 %v2407_v30  ;;  %v2453_v30 = vld [vmem:[%s3147_s1 + $0x208] sm:$0xff]   ;;  %v904_v48 = vld [vmem:[%s3149_s3 + $0x40] sm:$0xff] }
  0x1c   :  { %2187 = vmatprep.subr.bf16.mxu0 %v2410_v33  ;;  %v924_v33 = vld [vmem:[%s3149_s3 + $0xe0] sm:$0xff] }
  0x1d   :  { %2208 = vmatpush3.bf16.msra.mxu1 %v2409_v32  ;;  %v920_v32 = vld [vmem:[%s3149_s3 + $0xc0] sm:$0xff] }
  0x1e   :  { %2209 = vmatprep.subr.bf16.mxu1 %v2412_v36  ;;  %v2097_v34 = vcombine.high %v920_v32, %v924_v33  ;;  %v926_v36 = vld [vmem:[%s3149_s3 + $0xf0] sm:$0xff]  ;;  %v2096_v37 = vcombine.low %v920_v32, %v924_v33  ;;  %v1998_v23 = vld [vmem:[%s3151_s2] ss:$0 sm:$0xff] }
  0x1f   :  { %2188 = vmatpush3.bf16.msra.mxu0 %v2411_v35  ;;  %v922_v35 = vld [vmem:[%s3149_s3 + $0xd0] sm:$0xff] }
  0x20   :  { %2217 = vmatprep.subr.bf16.mxu0 %v2415_v41  ;;  %v2101_v38 = vcombine.high %v922_v35, %v926_v36  ;;  %v2100_v39 = vcombine.low %v922_v35, %v926_v36  ;;  %v916_v41 = vld [vmem:[%s3149_s3 + $0xa0] sm:$0xff] }
  0x21   :  { %2210 = vmatpush3.bf16.msra.mxu1 %v2414_v40  ;;  %v912_v40 = vld [vmem:[%s3149_s3 + $0x80] sm:$0xff] }
  0x22   :  { %2239 = vmatprep.subr.bf16.mxu1 %v2417_v45  ;;  %719 = vmatmul.mubr.bf16.vlgmr.msra.gmra.mxu0 %v205_v43  ;;  %v2089_v42 = vcombine.high %v912_v40, %v916_v41  ;;  %v914_v43 = vld [vmem:[%s3149_s3 + $0x90] sm:$0xff]  ;;  %v2088_v45 = vcombine.low %v912_v40, %v916_v41 }
  0x23   :  { %2218 = vmatpush3.bf16.msra.mxu0 %v2416_v47  ;;  %798 = vmatprep.mubr.bf16.mxu0 %v226_v53  ;;  %v2093_v46 = vcombine.high %v914_v43, %v918_v44  ;;  %v2092_v47 = vcombine.low %v914_v43, %v918_v44 }
  0x24   :  { %759 = vmatmul.mubr.bf16.vlgmr.msra.gmra.mxu1 %v227_v49  ;;  %2219 = vmatprep.subr.bf16.mxu0 %v2419_v50  ;;  %v908_v49 = vld [vmem:[%s3149_s3 + $0x60] sm:$0xff] }
  0x25   :  { %2240 = vmatpush3.bf16.msra.mxu1 %v2418_v52  ;;  %838 = vmatprep.mubr.bf16.mxu1 %v230_v56  ;;  %v2081_v50 = vcombine.high %v904_v48, %v908_v49  ;;  %v910_v52 = vld [vmem:[%s3149_s3 + $0x70] sm:$0xff]  ;;  %v2080_v53 = vcombine.low %v904_v48, %v908_v49  ;;  %v896_v56 = vld [vmem:[%s3149_s3] sm:$0xff] }
  0x26   :  { %2241 = vmatprep.subr.bf16.mxu1 %v2421_v54  ;;  %v2085_v54 = vcombine.high %v906_v51, %v910_v52 }
  0x27   :  { %2220 = vmatpush3.bf16.msra.mxu0 %v2420_v55  ;;  %v2084_v55 = vcombine.low %v906_v51, %v910_v52  ;;  %v905_v51 = vld [vmem:[%s3149_s3 + $0x48] sm:$0xff] }
  0x28   :  { %2221 = vmatprep.subr.bf16.mxu0 %v2423_v57  ;;  %v900_v57 = vld [vmem:[%s3149_s3 + $0x20] sm:$0xff]  ;;  %v909_v52 = vld [vmem:[%s3149_s3 + $0x68] sm:$0xff] }
  0x29   :  { %2242 = vmatpush3.bf16.msra.mxu1 %v2422_v58  ;;  %v2073_v58 = vcombine.high %v896_v56, %v900_v57 }
  0x2a   :  { %2243 = vmatprep.subr.bf16.mxu1 %v2425_v59  ;;  %v898_v59 = vld [vmem:[%s3149_s3 + $0x10] sm:$0xff] }
  0x2b   :  { %2222 = vmatpush3.bf16.msra.mxu0 %v2424_v60  ;;  %v902_v60 = vld [vmem:[%s3149_s3 + $0x30] sm:$0xff] }
  0x2c   :  { %2223 = vmatprep.subr.bf16.mxu0 %v2427_v61  ;;  %v2072_v61 = vcombine.low %v896_v56, %v900_v57  ;;  %v2458_v56 = vld [vmem:[%s3150_s5 + $0x30] sm:$0xff]   ;;  %v897_v57 = vld [vmem:[%s3149_s3 + $0x8] sm:$0xff] }
  0x2d   :  { %2244 = vmatpush3.bf16.msra.mxu1 %v2426_v62  ;;  %v2077_v62 = vcombine.high %v898_v59, %v902_v60 }
  0x2e   :  { %2245 = vmatprep.subr.bf16.mxu1 %v2429_v63  ;;  %v2076_v63 = vcombine.low %v898_v59, %v902_v60  ;;  %v2459_v59 = vld [vmem:[%s3150_s5 + $0x68] sm:$0xff]   ;;  %v2082_v60 = vcombine.low %v905_v51, %v909_v52 }
  0x2f   :  { %2224 = vmatpush3.bf16.msra.mxu0 %v2428_v0  ;;  %v2855_v0 = vld [vmem:[%s3149_s3 + $0xc8] sm:$0xff] }
  0x30   :  { %2225 = vmatprep.subr.bf16.mxu0 %v2431_v1  ;;  %v2860_v1 = vld [vmem:[%s3149_s3 + $0xe8] sm:$0xff] }
  0x31   :  { %2246 = vmatpush3.bf16.msra.mxu1 %v2430_v2  ;;  %v2099_v2 = vcombine.high %v2855_v0, %v2860_v1 }
  0x32   :  { %2247 = vmatprep.subr.bf16.mxu1 %v2433_v3  ;;  %v2098_v3 = vcombine.low %v2855_v0, %v2860_v1  ;;  %v927_v0 = vld [vmem:[%s3149_s3 + $0xf8] sm:$0xff]  ;;  %v2461_v1 = vld [vmem:[%s3150_s5 + $0x60] sm:$0xff]  }
  0x33   :  { %2226 = vmatpush3.bf16.msra.mxu0 %v2432_v4  ;;  %v2524_v4 = vmov 0  }
  0x34   :  { %2227 = vmatprep.subr.bf16.mxu0 %v2435_v5 }
  0x35   :  { %2248 = vmatpush3.bf16.msra.mxu1 %v2434_v6 }
  0x36   :  { %2249 = vmatprep.subr.bf16.mxu1 %v2437_v7 }
  0x37   :  { %2228 = vmatpush3.bf16.msra.mxu0 %v2436_v8  ;;  %v2455_v8 = vld [vmem:[%s3150_s5 + $0x78] sm:$0xff]  }
  0x38   :  { %2229 = vmatprep.subr.bf16.mxu0 %v2439_v9 }
  0x39   :  { %2250 = vmatpush3.bf16.msra.mxu1 %v2438_v10 }
  0x3a   :  { %2251 = vmatprep.subr.bf16.mxu1 %v2441_v11 }
  0x3b   :  { %2230 = vmatpush3.bf16.msra.mxu0 %v2440_v12 }
  0x3c   :  { %2231 = vmatprep.subr.bf16.mxu0 %v2443_v13 }
  0x3d   :  { %2252 = vmatpush3.bf16.msra.mxu1 %v2442_v14 }
  0x3e   :  { %2253 = vmatprep.subr.bf16.mxu1 %v2445_v15 }
  0x3f   :  { %2232 = vmatpush3.bf16.msra.mxu0 %v2444_v16 }
  0x40   :  { %2358 = vmatprep.subr.bf16.mxu0 %v2522_v20 }
  0x41   :  { %2254 = vmatpush3.bf16.msra.mxu1 %v2446_v18 }
  0x42   :  { %799 = vmatmul.mubr.bf16.vlgmr.msra.gmra.mxu0 %v212_v17  ;;  %1142 = vmatprep.subr.bf16.mxu1 %v2097_v34 }
  0x43   :  { %2359 = vmatpush3.bf16.msra.mxu0 %v2447_v19  ;;  %2374 = vmatprep.mubr.msk.bf16.mxu0 %vm2523_vm0, %v2522_v20 }
  0x44   :  { %839 = vmatmul.mubr.bf16.vlgmr.msra.gmra.mxu1 %v228_v21  ;;  %2360 = vmatprep.subr.bf16.mxu0 %v2522_v20 }
  0x45   :  { %1143 = vmatpush1.bf16.msra.mxu1 %v2096_v37  ;;  %1166 = vmatprep.mubr.bf16.mxu1 %v2524_v4 }
  0x46   :  { %1144 = vmatprep.subr.bf16.mxu1 %v2089_v42 }
  0x47   :  { %2361 = vmatpush3.bf16.msra.mxu0 %v2448_v22 }
  0x48   :  { %2362 = vmatprep.subr.bf16.mxu0 %v2522_v20 }
  0x49   :  { %1145 = vmatpush1.bf16.msra.mxu1 %v2088_v45  ;;  %v913_v45 = vld [vmem:[%s3149_s3 + $0x88] sm:$0xff] }
  0x4a   :  { %1146 = vmatprep.subr.bf16.mxu1 %v2081_v50  ;;  %v2456_v50 = vld [vmem:[%s3150_s5 + $0x38] sm:$0xff]  }
  0x4b   :  { %2363 = vmatpush3.bf16.msra.mxu0 %v2449_v25 }
  0x4c   :  { %2364 = vmatprep.subr.bf16.mxu0 %v2522_v20 }
  0x4d   :  { %1147 = vmatpush1.bf16.msra.mxu1 %v2080_v53  ;;  %v2457_v53 = vld [vmem:[%s3150_s5 + $0x70] sm:$0xff]  }
  0x4e   :  { %1148 = vmatprep.subr.bf16.mxu1 %v2073_v58  ;;  %v901_v58 = vld [vmem:[%s3149_s3 + $0x28] sm:$0xff] }
  0x4f   :  { %2365 = vmatpush3.bf16.msra.mxu0 %v2450_v26 }
  0x50   :  { %2366 = vmatprep.subr.bf16.mxu0 %v2522_v20 }
  0x51   :  { %1149 = vmatpush1.bf16.msra.mxu1 %v2072_v61  ;;  %v2075_v61 = vcombine.high %v897_v57, %v901_v58 }
  0x52   :  { %1183 = vmatprep.subr.bf16.mxu1 %v2099_v2  ;;  %v2074_v2 = vcombine.low %v897_v57, %v901_v58 }
  0x53   :  { %2367 = vmatpush3.bf16.msra.mxu0 %v2451_v27 }
  0x54   :  { %2368 = vmatprep.subr.bf16.mxu0 %v2522_v20 }
  0x57   :  { %2369 = vmatpush3.bf16.msra.mxu0 %v2452_v28 }
  0x58   :  { %2370 = vmatprep.subr.bf16.mxu0 %v2522_v20 }
  0x5b   :  { %2371 = vmatpush3.bf16.msra.mxu0 %v2453_v30 }
  0x5c   :  { %2372 = vmatprep.subr.bf16.mxu0 %v2522_v20 }
  0x5f   :  { %2373 = vmatpush3.bf16.msra.mxu0 %v2454_v31 }
  0x60   :  { %1224 = vmatprep.subr.bf16.mxu0 %v2101_v38 }
  0x62   :  { %2375 = vmatmul.mubr.bf16.vlgmr.msra.gmra.mxu0 %v244_v24 }
  0x63   :  { %1225 = vmatpush1.bf16.msra.mxu0 %v2100_v39  ;;  %1248 = vmatprep.mubr.bf16.mxu0 %v2524_v4 }
  0x64   :  { %1226 = vmatprep.subr.bf16.mxu0 %v2093_v46  ;;  %v917_v46 = vld [vmem:[%s3149_s3 + $0xa8] sm:$0xff] }
  0x65   :  { %v2091_v49 = vcombine.high %v913_v45, %v917_v46 }
  0x67   :  { %1227 = vmatpush1.bf16.msra.mxu0 %v2092_v47 }
  0x68   :  { %1228 = vmatprep.subr.bf16.mxu0 %v2085_v54  ;;  %v2090_v54 = vcombine.low %v913_v45, %v917_v46  ;;  %v932_v45 = vsub.s32 0, %v2640_v29  ;;  %v3031_v46 = vld [vmem:[%s3152_s4] sm:$0xff] }
  0x6b   :  { %1229 = vmatpush1.bf16.msra.mxu0 %v2084_v55  ;;  %v2083_v55 = vcombine.high %v905_v51, %v909_v52 }
  0x6c   :  { %1230 = vmatprep.subr.bf16.mxu0 %v2077_v62  ;;  %v2460_v62 = vld [vmem:[%s3150_s5 + $0x28] sm:$0xff]  }
  0x6f   :  { %1231 = vmatpush1.bf16.msra.mxu0 %v2076_v63  ;;  %v923_v63 = vld [vmem:[%s3149_s3 + $0xd8] sm:$0xff] }
  0x70   :  { %2270 = vmatprep.subr.bf16.mxu0 %v2455_v8  ;;  %v2464_v8 = vld [vmem:[%s3150_s5 + $0x58] sm:$0xff]  }
  0xe2   :  { %v2189_v5 = vpop.f32.mrf.mxu0 }
  0xe4   :  { %v2190_v6 = vpop.f32.mrf.mxu0  ;;  %v2211_v7 = vpop.f32.mrf.mxu1 }
  0xe5   :  { %v2191_v22 = vadd.f32 %v2190_v6, %v2189_v5  ;;  %v2462_v5 = vld [vmem:[%s3150_s5 + $0x20] sm:$0xff]   ;;  %v915_v6 = vld [vmem:[%s3149_s3 + $0x98] sm:$0xff] }
  0xe6   :  { %v2192_v9 = vpop.f32.mrf.mxu0  ;;  %v2212_v10 = vpop.f32.mrf.mxu1 }
  0xe7   :  { %v721_v24 = vadd.f32 %v2191_v22, %v1998_v23  ;;  %v2213_v25 = vadd.f32 %v2212_v10, %v2211_v7  ;;  %v919_v7 = vld [vmem:[%s3149_s3 + $0xb8] sm:$0xff]  ;;  %v2102_v9 = vcombine.low %v923_v63, %v927_v0 }
  0xe8   :  { %v2193_v11 = vpop.f32.mrf.mxu0  ;;  %v2214_v12 = vpop.f32.mrf.mxu1  ;;  %v2095_v10 = vcombine.high %v915_v6, %v919_v7  ;;  %v2463_v22 = vld [vmem:[%s3150_s5 + $0xf8] sm:$0xff]  }
  0xe9   :  { %v761_v27 = vadd.f32 %v2213_v25, %v721_v24  ;;  %v2466_v11 = vld [vmem:[%s3150_s5 + $0x18] sm:$0xff]   ;;  %v2467_v24 = vld [vmem:[%s3150_s5 + $0xf0] sm:$0xff]  }
  0xea   :  { %v2215_v13 = vpop.f32.mrf.mxu1  ;;  %v907_v12 = vld [vmem:[%s3149_s3 + $0x58] sm:$0xff]  ;;  %v2469_v25 = vld [vmem:[%s3150_s5 + $0xb0] sm:$0xff]  }
  0xeb   :  { %v911_v13 = vld [vmem:[%s3149_s3 + $0x78] sm:$0xff] }
  0xec   :  { %v2465_v23 = vld [vmem:[%s3150_s5 + $0xb8] sm:$0xff]  }
 0x102   :  { %v2233_v14 = vpop.f32.mrf.mxu0 }
 0x104   :  { %v2234_v15 = vpop.f32.mrf.mxu0  ;;  %v2255_v16 = vpop.f32.mrf.mxu1 }
 0x105   :  { %v2235_v26 = vadd.f32 %v2234_v15, %v2233_v14  ;;  %v2468_v14 = vld [vmem:[%s3150_s5 + $0x50] sm:$0xff]   ;;  %v2094_v15 = vcombine.low %v915_v6, %v919_v7 }
 0x106   :  { %v2236_v17 = vpop.f32.mrf.mxu0  ;;  %v2256_v18 = vpop.f32.mrf.mxu1  ;;  %v2485_v6 = vld [vmem:[%s3150_s5 + $0x170] sm:$0xff]  }
 0x107   :  { %v801_v28 = vadd.f32 %v2235_v26, %v761_v27  ;;  %v2257_v30 = vadd.f32 %v2256_v18, %v2255_v16  ;;  %v2087_v16 = vcombine.high %v907_v12, %v911_v13  ;;  %v2470_v17 = vld [vmem:[%s3150_s5 + $0x10] sm:$0xff]   ;;  %v899_v18 = vld [vmem:[%s3149_s3 + $0x18] sm:$0xff]  ;;  %v2471_v26 = vld [vmem:[%s3150_s5 + $0xe8] sm:$0xff]  }
 0x108   :  { %v2237_v19 = vpop.f32.mrf.mxu0  ;;  %v2258_v20 = vpop.f32.mrf.mxu1  ;;  %v2472_v27 = vld [vmem:[%s3150_s5 + $0x48] sm:$0xff]  }
 0x109   :  { %v841_v31 = vadd.f32 %v2257_v30, %v801_v28  ;;  %v903_v19 = vld [vmem:[%s3149_s3 + $0x38] sm:$0xff]  ;;  %v2086_v20 = vcombine.low %v907_v12, %v911_v13  ;;  %v2473_v28 = vld [vmem:[%s3150_s5 + $0xa8] sm:$0xff]  }
 0x10a   :  { %v2259_v21 = vpop.f32.mrf.mxu1  ;;  %v2474_v30 = vld [vmem:[%s3150_s5 + $0x8] sm:$0xff]  }
 0x10b   :  { %v2078_v21 = vcombine.low %v899_v18, %v903_v19 }
 0x122   :  { %v880_v32 = vpop.f32.mrf.mxu0 }
 0x123   :  { %v881_v33 = vadd.f32 %v880_v32, %v841_v31  ;;  %v2475_v31 = vld [vmem:[%s3150_s5 + $0xe0] sm:$0xff]  }
 0x124   :  { %v2376_v34 = vpop.f32.mrf.mxu0  ;;  %v2476_v32 = vld [vmem:[%s3150_s5 + $0x40] sm:$0xff]  }
 0x125   :  { %v887_v35 = vmul.f32 %v881_v33, %v881_v33  ;;  %v886_v43 = vmul.f32 0.5, %v881_v33  ;;  %v2478_v34 = vld [vmem:[%s3150_s5] sm:$0xff]  }
 0x126   :  { %v883_v36 = vpop.f32.mrf.mxu0 }
 0x127   :  { %v888_v37 = vmul.f32 %v887_v35, %v881_v33  ;;  %v2479_v35 = vld [vmem:[%s3150_s5 + $0xd8] sm:$0xff]  }
 0x128   :  { %v2377_v38 = vpop.f32.mrf.mxu0  ;;  %v2480_v36 = vld [vmem:[%s3150_s5 + $0x98] sm:$0xff]  }
 0x129   :  { %v889_v39 = vmul.f32 0.044715, %v888_v37  ;;  %v2481_v37 = vld [vmem:[%s3150_s5 + $0x178] sm:$0xff]   ;;  %v2483_v38 = vld [vmem:[%s3150_s5 + $0xd0] sm:$0xff]  }
 0x12b   :  { %v890_v40 = vadd.f32 %v889_v39, %v881_v33  ;;  %v2477_v33 = vld [vmem:[%s3150_s5 + $0xa0] sm:$0xff]   ;;  %v2484_v39 = vld [vmem:[%s3150_s5 + $0x90] sm:$0xff]  }
 0x12d   :  { %v891_v41 = vmul.f32 0.7978846, %v890_v40  ;;  %v2487_v40 = vld [vmem:[%s3150_s5 + $0xc8] sm:$0xff]  }
 0x12f   :  { %2519 = vtanh.f32 %v891_v41  ;;  %v2488_v41 = vld [vmem:[%s3150_s5 + $0x88] sm:$0xff]  }
 0x13c   :  { %v2520_v42 = vpop.eup %2519 }
 0x13d   :  { %v893_v44 = vadd.f32 1.0, %v2520_v42  ;;  %v2491_v42 = vld [vmem:[%s3150_s5 + $0xc0] sm:$0xff]  }
 0x13f   :  { %v894_v47 = vmul.f32 %v893_v44, %v886_v43  ;;  %v2492_v43 = vld [vmem:[%s3150_s5 + $0x80] sm:$0xff]   ;;  %v2495_v44 = vld [vmem:[%s3150_s5 + $0x1f8] sm:$0xff]  }
 0x141   :  { %v2880_v48 = vpack.c.bf16 %v894_v47, %v894_v47  ;;  %v936_v47 = vsub.s32 1, %v2640_v29 }
 0x143   :  { %2104 = vmatmul.mubr.msk.bf16.vlgmr.msra.gmra.mxu1 %vm1130_vm1, %v2880_v48  ;;  %2106 = vmatmul.mubr.msk.bf16.vlgmr.msra.gmra.mxu0 %vm1130_vm1, %v2880_v48 }
 0x144   :  { %1184 = vmatpush1.bf16.msra.mxu1 %v2098_v3  ;;  %1207 = vmatprep.mubr.bf16.mxu1 %v2524_v4  ;;  %v2103_v3 = vcombine.high %v923_v63, %v927_v0 }
 0x145   :  { %1185 = vmatprep.subr.bf16.mxu1 %v2091_v49  ;;  %2271 = vmatpush3.bf16.msra.mxu0 %v2456_v50  ;;  %v933_v49 = vrot.slane %v3031_v46, %v932_v45  ;;  %v937_v50 = vrot.slane %v3031_v46, %v936_v47  ;;  %v2508_v45 = vld [vmem:[%s3150_s5 + $0x140] sm:$0xff]  }
 0x146   :  { %2272 = vmatprep.subr.bf16.mxu0 %v2457_v53 }
 0x148   :  { %1186 = vmatpush1.bf16.msra.mxu1 %v2090_v54 }
 0x149   :  { %1187 = vmatprep.subr.bf16.mxu1 %v2083_v55  ;;  %2273 = vmatpush3.bf16.msra.mxu0 %v2458_v56 }
 0x14a   :  { %2274 = vmatprep.subr.bf16.mxu0 %v2459_v59 }
 0x14c   :  { %1188 = vmatpush1.bf16.msra.mxu1 %v2082_v60 }
 0x14d   :  { %1189 = vmatprep.subr.bf16.mxu1 %v2075_v61  ;;  %2275 = vmatpush3.bf16.msra.mxu0 %v2460_v62 }
 0x14e   :  { %2276 = vmatprep.subr.bf16.mxu0 %v2461_v1 }
 0x150   :  { %1190 = vmatpush1.bf16.msra.mxu1 %v2074_v2 }
 0x151   :  { %1265 = vmatprep.subr.bf16.mxu1 %v2103_v3  ;;  %2277 = vmatpush3.bf16.msra.mxu0 %v2462_v5  ;;  %v2482_v3 = vld [vmem:[%s3150_s5 + $0x138] sm:$0xff]  }
 0x152   :  { %2278 = vmatprep.subr.bf16.mxu0 %v2464_v8  ;;  %v940_v8 = vsub.s32 2, %v2640_v29 }
 0x153   :  { %2105 = vmatmul.mubr.msk.bf16.vlgmr.msra.gmra.mxu1 %vm1130_vm1, %v2880_v48 }
 0x154   :  { %1266 = vmatpush1.bf16.msra.mxu1 %v2102_v9  ;;  %1289 = vmatprep.mubr.bf16.mxu1 %v2524_v4  ;;  %v2079_v4 = vcombine.high %v899_v18, %v903_v19  ;;  %v2486_v9 = vld [vmem:[%s3150_s5 + $0x130] sm:$0xff]   ;;  %v941_v12 = vrot.slane %v3031_v46, %v940_v8 }
 0x155   :  { %1267 = vmatprep.subr.bf16.mxu1 %v2095_v10  ;;  %2279 = vmatpush3.bf16.msra.mxu0 %v2466_v11  ;;  %v944_v10 = vsub.s32 3, %v2640_v29  ;;  %v2489_v11 = vld [vmem:[%s3150_s5 + $0x168] sm:$0xff]  }
 0x156   :  { %2280 = vmatprep.subr.bf16.mxu0 %v2468_v14  ;;  %v2490_v14 = vld [vmem:[%s3150_s5 + $0x128] sm:$0xff]  }
 0x157   :  { %v945_v13 = vrot.slane %v3031_v46, %v944_v10 }
 0x158   :  { %1268 = vmatpush1.bf16.msra.mxu1 %v2094_v15 }
 0x159   :  { %1269 = vmatprep.subr.bf16.mxu1 %v2087_v16  ;;  %2281 = vmatpush3.bf16.msra.mxu0 %v2470_v17  ;;  %v2493_v16 = vld [vmem:[%s3150_s5 + $0x160] sm:$0xff]  }
 0x15a   :  { %2282 = vmatprep.subr.bf16.mxu0 %v2472_v27  ;;  %v2498_v27 = vld [vmem:[%s3150_s5 + $0x118] sm:$0xff]  }
 0x15c   :  { %1270 = vmatpush1.bf16.msra.mxu1 %v2086_v20  ;;  %v2494_v20 = vld [vmem:[%s3150_s5 + $0x120] sm:$0xff]  }
 0x15d   :  { %1271 = vmatprep.subr.bf16.mxu1 %v2079_v4  ;;  %2283 = vmatpush3.bf16.msra.mxu0 %v2474_v30 }
 0x15e   :  { %2284 = vmatprep.subr.bf16.mxu0 %v2476_v32  ;;  %v2500_v32 = vld [vmem:[%s3150_s5 + $0x150] sm:$0xff]  }
 0x160   :  { %1272 = vmatpush1.bf16.msra.mxu1 %v2078_v21 }
 0x161   :  { %2292 = vmatprep.subr.bf16.mxu1 %v2463_v22  ;;  %2285 = vmatpush3.bf16.msra.mxu0 %v2478_v34  ;;  %v2496_v22 = vld [vmem:[%s3150_s5 + $0x158] sm:$0xff]   ;;  %v2502_v34 = vld [vmem:[%s3150_s5 + $0x110] sm:$0xff]  }
 0x162   :  { %2314 = vmatprep.subr.bf16.mxu0 %v2481_v37  ;;  %v2503_v37 = vld [vmem:[%s3150_s5 + $0x1e8] sm:$0xff]  }
 0x163   :  { %2107 = vmatmul.mubr.msk.bf16.vlgmr.msra.gmra.mxu1 %vm1130_vm1, %v2880_v48  ;;  %v952_v48 = vsub.s32 5, %v2640_v29 }
 0x164   :  { %2293 = vmatpush3.bf16.msra.mxu1 %v2465_v23 }
 0x165   :  { %2294 = vmatprep.subr.bf16.mxu1 %v2467_v24  ;;  %v953_v51 = vrot.slane %v3031_v46, %v952_v48 }
 0x168   :  { %2295 = vmatpush3.bf16.msra.mxu1 %v2469_v25 }
 0x169   :  { %2296 = vmatprep.subr.bf16.mxu1 %v2471_v26  ;;  %v2497_v26 = vld [vmem:[%s3150_s5 + $0x1b8] sm:$0xff]  }
 0x16c   :  { %2297 = vmatpush3.bf16.msra.mxu1 %v2473_v28  ;;  %v948_v28 = vsub.s32 4, %v2640_v29 }
 0x16d   :  { %2298 = vmatprep.subr.bf16.mxu1 %v2475_v31  ;;  %v2499_v31 = vld [vmem:[%s3150_s5 + $0x1f0] sm:$0xff]  }
 0x170   :  { %2299 = vmatpush3.bf16.msra.mxu1 %v2477_v33  ;;  %v2501_v33 = vld [vmem:[%s3150_s5 + $0x1b0] sm:$0xff]  }
 0x171   :  { %2300 = vmatprep.subr.bf16.mxu1 %v2479_v35  ;;  %v960_v35 = vsub.s32 7, %v2640_v29 }
 0x174   :  { %2301 = vmatpush3.bf16.msra.mxu1 %v2480_v36  ;;  %v949_v36 = vrot.slane %v3031_v46, %v948_v28 }
 0x175   :  { %2302 = vmatprep.subr.bf16.mxu1 %v2483_v38  ;;  %v2504_v38 = vld [vmem:[%s3150_s5 + $0x148] sm:$0xff]  }
 0x178   :  { %2303 = vmatpush3.bf16.msra.mxu1 %v2484_v39  ;;  %v961_v39 = vrot.slane %v3031_v46, %v960_v35 }
 0x179   :  { %2304 = vmatprep.subr.bf16.mxu1 %v2487_v40  ;;  %v2505_v40 = vld [vmem:[%s3150_s5 + $0x1a8] sm:$0xff]  }
 0x17c   :  { %2305 = vmatpush3.bf16.msra.mxu1 %v2488_v41  ;;  %v2506_v41 = vld [vmem:[%s3150_s5 + $0x108] sm:$0xff]  }
 0x17d   :  { %2306 = vmatprep.subr.bf16.mxu1 %v2491_v42 }
 0x180   :  { %2307 = vmatpush3.bf16.msra.mxu1 %v2492_v43 }
 0x181   :  { %2336 = vmatprep.subr.bf16.mxu1 %v2495_v44  ;;  %v2507_v44 = vld [vmem:[%s3150_s5 + $0x1e0] sm:$0xff]  }
 0x203   :  { %v1168_v52 = vpop.f32.mrf.mxu1  ;;  %v3038_v53 = vpop.f32.mrf.mxu0 }
 0x204   :  { %v1169_v54 = vadd.f32 %v1168_v52, %v933_v49  ;;  %v1251_v42 = vadd.f32 %v3038_v53, %v949_v36  ;;  %v2509_v49 = vld [vmem:[%s3150_s5 + $0x1a0] sm:$0xff]   ;;  %v2511_v53 = vld [vmem:[%s3150_s5 + $0x1d8] sm:$0xff]  }
 0x205   :  { %v1170_v55 = vpop.f32.mrf.mxu1  ;;  %v1252_v56 = vpop.f32.mrf.mxu0 }
 0x206   :  { %v1171_v57 = vadd.f32 %v1170_v55, %v937_v50  ;;  %v1253_v58 = vadd.f32 %v1252_v56, %v953_v51  ;;  %v1298_v59 = vmax.f32 %v1169_v54, 0.0  ;;  %v2510_v50 = vld [vmem:[%s3150_s5 + $0x100] sm:$0xff]   ;;  %v1302_v51 = vmax.f32 %v1251_v42, 0.0 }
 0x207   :  { %v1172_v60 = vpop.f32.mrf.mxu1  ;;  %v1254_v61 = vpop.f32.mrf.mxu0 }
 0x208   :  { %v1299_v62 = vmax.f32 %v1171_v57, 0.0  ;;  %v1303_v63 = vmax.f32 %v1253_v58, 0.0  ;;  %v1306_v5 = vpack.c.bf16 %v1298_v59, %v1298_v59  ;;  %v2512_v57 = vld [vmem:[%s3150_s5 + $0x198] sm:$0xff]   ;;  %v1310_v58 = vpack.c.bf16 %v1302_v51, %v1302_v51  ;;  %v2513_v60 = vld [vmem:[%s3150_s5 + $0x1d0] sm:$0xff]  }
 0x209   :  { %v1173_v0 = vpop.f32.mrf.mxu1  ;;  %v1255_v1 = vpop.f32.mrf.mxu0  ;;  %v956_v59 = vsub.s32 6, %v2640_v29  ;;  %v2514_v61 = vld [vmem:[%s3150_s5 + $0x190] sm:$0xff]   ;;  %v2516_v29 = vld [vmem:[%s3150_s5 + $0x188] sm:$0xff]  }
 0x20a   :  { %v1307_v2 = vpack.c.bf16 %v1299_v62, %v1299_v62  ;;  %v1311_v7 = vpack.c.bf16 %v1303_v63, %v1303_v63  ;;  %v2515_v63 = vld [vmem:[%s3150_s5 + $0x1c8] sm:$0xff]   ;;  %v2517_v1 = vld [vmem:[%s3150_s5 + $0x1c0] sm:$0xff]  }
 0x20b   :  { %v957_v62 = vrot.slane %v3031_v46, %v956_v59  ;;  %v2518_v46 = vld [vmem:[%s3150_s5 + $0x180] sm:$0xff]  }
 0x20c   :  { %1865 = vmatprep.mubr.bf16.mxu0 %v1307_v2 }
 0x20d   :  { %1866 = vmatmul.mubr.bf16.vlgmr.msra.gmra.mxu0 %v1306_v5 }
 0x20e   :  { %2315 = vmatpush3.bf16.msra.mxu0 %v2482_v3  ;;  %1945 = vmatprep.mubr.bf16.mxu0 %v1311_v7 }
 0x20f   :  { %2316 = vmatprep.subr.bf16.mxu0 %v2485_v6 }
 0x212   :  { %2317 = vmatpush3.bf16.msra.mxu0 %v2486_v9 }
 0x213   :  { %v1209_v15 = vpop.f32.mrf.mxu1  ;;  %2318 = vmatprep.subr.bf16.mxu0 %v2489_v11 }
 0x214   :  { %v1210_v17 = vadd.f32 %v1209_v15, %v941_v12 }
 0x215   :  { %v1211_v18 = vpop.f32.mrf.mxu1 }
 0x216   :  { %v1212_v19 = vadd.f32 %v1211_v18, %v945_v13  ;;  %2319 = vmatpush3.bf16.msra.mxu0 %v2490_v14  ;;  %v1300_v4 = vmax.f32 %v1210_v17, 0.0  ;;  %v2108_v18 = vld [vmem:[%s3153_s6] ss:$0 sm:$0xff] }
 0x217   :  { %v1213_v21 = vpop.f32.mrf.mxu1  ;;  %2320 = vmatprep.subr.bf16.mxu0 %v2493_v16 }
 0x218   :  { %v1301_v23 = vmax.f32 %v1212_v19, 0.0  ;;  %v1308_v30 = vpack.c.bf16 %v1300_v4, %v1300_v4 }
 0x219   :  { %v1214_v24 = vpop.f32.mrf.mxu1 }
 0x21a   :  { %v1309_v25 = vpack.c.bf16 %v1301_v23, %v1301_v23  ;;  %2321 = vmatpush3.bf16.msra.mxu0 %v2494_v20 }
 0x21b   :  { %2322 = vmatprep.subr.bf16.mxu0 %v2496_v22 }
 0x21c   :  { %1905 = vmatprep.mubr.bf16.mxu1 %v1309_v25 }
 0x21d   :  { %1906 = vmatmul.mubr.bf16.vlgmr.msra.gmra.mxu1 %v1308_v30 }
 0x21e   :  { %2337 = vmatpush3.bf16.msra.mxu1 %v2497_v26  ;;  %2323 = vmatpush3.bf16.msra.mxu0 %v2498_v27 }
 0x21f   :  { %2338 = vmatprep.subr.bf16.mxu1 %v2499_v31  ;;  %2324 = vmatprep.subr.bf16.mxu0 %v2500_v32 }
 0x222   :  { %2339 = vmatpush3.bf16.msra.mxu1 %v2501_v33  ;;  %2325 = vmatpush3.bf16.msra.mxu0 %v2502_v34 }
 0x223   :  { %v1291_v43 = vpop.f32.mrf.mxu1  ;;  %2340 = vmatprep.subr.bf16.mxu1 %v2503_v37  ;;  %2326 = vmatprep.subr.bf16.mxu0 %v2504_v38 }
 0x224   :  { %v1292_v0 = vadd.f32 %v1291_v43, %v957_v62 }
 0x225   :  { %v1293_v47 = vpop.f32.mrf.mxu1 }
 0x226   :  { %v1294_v48 = vadd.f32 %v1293_v47, %v961_v39  ;;  %2341 = vmatpush3.bf16.msra.mxu1 %v2505_v40  ;;  %2327 = vmatpush3.bf16.msra.mxu0 %v2506_v41  ;;  %v1304_v2 = vmax.f32 %v1292_v0, 0.0 }
 0x227   :  { %v1295_v52 = vpop.f32.mrf.mxu1  ;;  %2342 = vmatprep.subr.bf16.mxu1 %v2507_v44  ;;  %2328 = vmatprep.subr.bf16.mxu0 %v2508_v45 }
 0x228   :  { %v1305_v54 = vmax.f32 %v1294_v48, 0.0  ;;  %v1312_v3 = vpack.c.bf16 %v1304_v2, %v1304_v2 }
 0x229   :  { %v1296_v55 = vpop.f32.mrf.mxu1 }
 0x22a   :  { %v1313_v56 = vpack.c.bf16 %v1305_v54, %v1305_v54  ;;  %2343 = vmatpush3.bf16.msra.mxu1 %v2509_v49  ;;  %2329 = vmatpush3.bf16.msra.mxu0 %v2510_v50 }
 0x22b   :  { %2344 = vmatprep.subr.bf16.mxu1 %v2511_v53 }
 0x22c   :  { %1985 = vmatprep.mubr.bf16.mxu1 %v1313_v56 }
 0x22d   :  { %1946 = vmatmul.mubr.bf16.vlgmr.msra.gmra.mxu0 %v1310_v58 }
 0x22e   :  { %2345 = vmatpush3.bf16.msra.mxu1 %v2512_v57 }
 0x22f   :  { %2346 = vmatprep.subr.bf16.mxu1 %v2513_v60 }
 0x232   :  { %2347 = vmatpush3.bf16.msra.mxu1 %v2514_v61 }
 0x233   :  { %2348 = vmatprep.subr.bf16.mxu1 %v2515_v63 }
 0x236   :  { %2349 = vmatpush3.bf16.msra.mxu1 %v2516_v29 }
 0x237   :  { %2350 = vmatprep.subr.bf16.mxu1 %v2517_v1 }
 0x23a   :  { %2351 = vmatpush3.bf16.msra.mxu1 %v2518_v46 }
 0x23d   :  { %1986 = vmatmul.mubr.bf16.vlgmr.msra.gmra.mxu1 %v1312_v3 }
 0x2cd   :  { %v2286_v5 = vpop.f32.mrf.mxu0 }
 0x2cf   :  { %v2287_v6 = vpop.f32.mrf.mxu0 }
 0x2d0   :  { %v2288_v17 = vadd.f32 %v2287_v6, %v2286_v5 }
 0x2d1   :  { %v2289_v7 = vpop.f32.mrf.mxu0 }
 0x2d2   :  { %v1868_v20 = vadd.f32 %v2288_v17, %v2108_v18 }
 0x2d3   :  { %v2290_v8 = vpop.f32.mrf.mxu0 }
 0x2dd   :  { %v2308_v9 = vpop.f32.mrf.mxu1 }
 0x2df   :  { %v2309_v10 = vpop.f32.mrf.mxu1 }
 0x2e0   :  { %v2310_v19 = vadd.f32 %v2309_v10, %v2308_v9 }
 0x2e1   :  { %v2311_v11 = vpop.f32.mrf.mxu1 }
 0x2e2   :  { %v1908_v22 = vadd.f32 %v2310_v19, %v1868_v20 }
 0x2e3   :  { %v2312_v12 = vpop.f32.mrf.mxu1 }
 0x2ed   :  { %v2330_v13 = vpop.f32.mrf.mxu0 }
 0x2ef   :  { %v2331_v14 = vpop.f32.mrf.mxu0 }
 0x2f0   :  { %v2332_v4 = vadd.f32 %v2331_v14, %v2330_v13 }
 0x2f1   :  { %v2333_v15 = vpop.f32.mrf.mxu0 }
 0x2f2   :  { %v1948_v24 = vadd.f32 %v2332_v4, %v1908_v22 }
 0x2f3   :  { %v2334_v16 = vpop.f32.mrf.mxu0 }
 0x2fd   :  { %v2352_v21 = vpop.f32.mrf.mxu1 }
 0x2ff   :  { %v2353_v23 = vpop.f32.mrf.mxu1 }
 0x300   :  { %v2354_v25 = vadd.f32 %v2353_v23, %v2352_v21 }
 0x301   :  { %v2355_v26 = vpop.f32.mrf.mxu1 }
 0x302   :  { %v1988_v27 = vadd.f32 %v2354_v25, %v1948_v24 }
 0x303   :  { %v2356_v28 = vpop.f32.mrf.mxu1 }
 0x304   :  { %1993 = vst [vmem:[%s3154_s7] sm:$0x3] %v1988_v27 }

</bundles_post_ra>
